<compile_context>
chip_gen: v5e
topology: v5e:2x2
jax: 0.10.0
libtpu: 0.0.40
codegen_flags: <defaults>
</compile_context>

<pallas_src>
import math

import jax
import jax.numpy as jnp
from jax.experimental import pallas as pl
from jax.experimental.pallas import tpu as pltpu

N_LAYERS = 2
N_HEADS = 4
EPS = 1e-6  # LayerNorm eps (added to std, annotated-transformer convention)

PARAM_ORDER = ("ln1a", "ln1b", "wqkv", "bqkv", "wo", "bo",
               "ln2a", "ln2b", "w1", "b1", "w2", "b2", "lnfa", "lnfb")


# ----------------------------- in-kernel helpers -----------------------------

def _layer_norm(x, a, b):
    # a * (x - mean) / (std + eps) + b with unbiased std (ddof=1), like torch.std
    mean = jnp.mean(x, axis=-1, keepdims=True)
    var = jnp.sum((x - mean) ** 2, axis=-1, keepdims=True) * (1.0 / (x.shape[-1] - 1))
    std = jnp.sqrt(var)
    return a * (x - mean) / (std + EPS) + b


def _softmax(s):
    m = jnp.max(s, axis=-1, keepdims=True)
    e = jnp.exp(s - m)
    return e / jnp.sum(e, axis=-1, keepdims=True)


# --------------------------------- kernel ------------------------------------

def make_encoder_kernel(bt, seq, d_model, n_heads):
    dk = d_model // n_heads
    scale = 1.0 / math.sqrt(dk)

    def kernel(x_ref, mb_ref,
               ln1a_ref, ln1b_ref, wqkv_ref, bqkv_ref, wo_ref, bo_ref,
               ln2a_ref, ln2b_ref, w1_ref, b1_ref, w2_ref, b2_ref,
               lnfa_ref, lnfb_ref, o_ref, xs):
        l = pl.program_id(1)

        # Load the batch-tile activations into the carried scratch at layer 0.
        @pl.when(l == 0)
        def _():
            xs[...] = x_ref[...]

        x = xs[...]                                   # (BT*S, D)

        # ---- sublayer 1: pre-norm multi-head self-attention + residual ----
        y = _layer_norm(x, ln1a_ref[0], ln1b_ref[0])
        # single lane-dense fused QKV projection: (BT*S, D) @ (D, 3D)
        qkv = jnp.dot(y, wqkv_ref[0], preferred_element_type=jnp.float32) + bqkv_ref[0]

        pv_rows = []
        for b in range(bt):                           # tiny per-sequence work
            r0 = b * seq
            mb = mb_ref[b]                            # (1, S) additive mask bias
            heads = []
            for h in range(n_heads):
                c = h * dk
                qh = qkv[r0:r0 + seq, c:c + dk]
                kh = qkv[r0:r0 + seq, d_model + c:d_model + c + dk]
                vh = qkv[r0:r0 + seq, 2 * d_model + c:2 * d_model + c + dk]
                s = jax.lax.dot_general(qh, kh, (((1,), (1,)), ((), ())),
                                        preferred_element_type=jnp.float32) * scale + mb
                heads.append(jnp.dot(_softmax(s), vh,
                                     preferred_element_type=jnp.float32))
            pv_rows.append(jnp.concatenate(heads, axis=-1))   # (S, D)
        pv = jnp.concatenate(pv_rows, axis=0)                 # (BT*S, D)

        # single lane-dense output projection with bias folded in
        attn = jnp.dot(pv, wo_ref[0], preferred_element_type=jnp.float32) + bo_ref[0]
        x = x + attn                                   # dropout is identity (eval)

        # ---- sublayer 2: pre-norm position-wise feed-forward + residual ----
        y = _layer_norm(x, ln2a_ref[0], ln2b_ref[0])
        h1 = jnp.maximum(
            jnp.dot(y, w1_ref[0], preferred_element_type=jnp.float32) + b1_ref[0], 0.0)
        x = x + jnp.dot(h1, w2_ref[0], preferred_element_type=jnp.float32) + b2_ref[0]

        xs[...] = x                                    # carry across layer axis

        # final Encoder LayerNorm after the last layer; lane-dense output store
        @pl.when(l == pl.num_programs(1) - 1)
        def _():
            o_ref[...] = _layer_norm(x, lnfa_ref[...], lnfb_ref[...])

    return kernel


# --------------------------------- wrapper -----------------------------------

def encoder_pallas(x, mask, params, *, bt=2):
    B, S, D = x.shape
    L = params["wqkv"].shape[0]
    assert B % bt == 0, "batch must be divisible by the batch tile"

    # lane-dense 2-D slab for activations / output
    x2d = x.reshape(B * S, D)
    # hoisted mask handling: additive bias, computed once
    mask_bias = jnp.where(mask == 0, -1e9, 0.0).astype(jnp.float32)   # (B, 1, S)

    def wspec(shape):
        # per-layer weight: (L, ...) -> one layer resident at a time
        n = len(shape)
        return pl.BlockSpec((1,) + tuple(shape[1:]),
                            lambda b, l, _n=n: (l,) + (0,) * (_n - 1))

    def fspec(shape):
        # final-norm params: fully resident, constant index
        n = len(shape)
        return pl.BlockSpec(tuple(shape), lambda b, l, _n=n: (0,) * _n)

    in_specs = [
        pl.BlockSpec((bt * S, D), lambda b, l: (b, 0)),     # x2d  (fetched once per b)
        pl.BlockSpec((bt, 1, S), lambda b, l: (b, 0, 0)),   # mask bias
    ]
    for name in PARAM_ORDER:
        if name in ("lnfa", "lnfb"):
            in_specs.append(fspec(params[name].shape))
        else:
            in_specs.append(wspec(params[name].shape))

    grid_spec = pltpu.PrefetchScalarGridSpec(
        num_scalar_prefetch=0,
        grid=(B // bt, L),                              # layer axis innermost
        in_specs=in_specs,
        out_specs=pl.BlockSpec((bt * S, D), lambda b, l: (b, 0)),
        scratch_shapes=[pltpu.VMEM((bt * S, D), jnp.float32)],   # carried activations
    )

    out2d = pl.pallas_call(
        make_encoder_kernel(bt, S, D, N_HEADS),
        out_shape=jax.ShapeDtypeStruct((B * S, D), jnp.float32),
        grid_spec=grid_spec,
        compiler_params=pltpu.CompilerParams(
            dimension_semantics=("parallel", "arbitrary")),
    )(x2d, mask_bias, *[params[name] for name in PARAM_ORDER])
    return out2d.reshape(B, S, D)


# ------------------------------ params & ref ----------------------------------

def init_params(key, d_model, d_ff, n_layers):
    ki = iter(jax.random.split(key, n_layers * 8))

    def dense(fan_in, shape):
        return jax.random.normal(next(ki), shape, dtype=jnp.float32) / math.sqrt(fan_in)

    names = ("ln1a", "ln1b", "wqkv", "bqkv", "wo", "bo",
             "ln2a", "ln2b", "w1", "b1", "w2", "b2")
    layers = {k: [] for k in names}
    for _ in range(n_layers):
        layers["ln1a"].append(jnp.ones((1, d_model), jnp.float32))
        layers["ln1b"].append(jnp.zeros((1, d_model), jnp.float32))
        # fused, lane-dense QKV weights: columns = [Wq | Wk | Wv], head-major per chunk
        layers["wqkv"].append(dense(d_model, (d_model, 3 * d_model)))
        layers["bqkv"].append(dense(d_model, (1, 3 * d_model)))
        layers["wo"].append(dense(d_model, (d_model, d_model)))
        layers["bo"].append(dense(d_model, (1, d_model)))
        layers["ln2a"].append(jnp.ones((1, d_model), jnp.float32))
        layers["ln2b"].append(jnp.zeros((1, d_model), jnp.float32))
        layers["w1"].append(dense(d_model, (d_model, d_ff)))
        layers["b1"].append(dense(d_model, (1, d_ff)))
        layers["w2"].append(dense(d_ff, (d_ff, d_model)))
        layers["b2"].append(dense(d_ff, (1, d_model)))
    params = {k: jnp.stack(v) for k, v in layers.items()}
    params["lnfa"] = jnp.ones((1, d_model), jnp.float32)
    params["lnfb"] = jnp.zeros((1, d_model), jnp.float32)
    return params


def encoder_ref(x, mask, p):
    """Pure-JAX reference with identical math (for validation)."""
    def ln(z, a, b):
        mean = jnp.mean(z, -1, keepdims=True)
        var = jnp.sum((z - mean) ** 2, -1, keepdims=True) / (z.shape[-1] - 1)
        return a * (z - mean) / (jnp.sqrt(var) + EPS) + b

    B, S, D = x.shape
    H = N_HEADS
    dk = D // H
    scale = 1.0 / math.sqrt(dk)
    n_layers = p["wqkv"].shape[0]
    for l in range(n_layers):
        y = ln(x, p["ln1a"][l], p["ln1b"][l])
        qkv = y @ p["wqkv"][l] + p["bqkv"][l]
        q = qkv[..., :D].reshape(B, S, H, dk)
        k = qkv[..., D:2 * D].reshape(B, S, H, dk)
        v = qkv[..., 2 * D:].reshape(B, S, H, dk)
        s = jnp.einsum("bqhd,bkhd->bhqk", q, k) * scale
        s = jnp.where(mask[:, :, None, :] == 0, -1e9, s)
        pa = jax.nn.softmax(s, axis=-1)
        ctx = jnp.einsum("bhqk,bkhd->bqhd", pa, v).reshape(B, S, D)
        x = x + ctx @ p["wo"][l] + p["bo"][l]
        y = ln(x, p["ln2a"][l], p["ln2b"][l])
        h1 = jax.nn.relu(y @ p["w1"][l] + p["b1"][l])
        x = x + h1 @ p["w2"][l] + p["b2"][l]
    return ln(x, p["lnfa"], p["lnfb"])


if __name__ == "__main__":
    B, S, D, F = 4, 8, 32, 64
    BT = 2                      # batch tile -> grid (2, N_LAYERS)
    key = jax.random.PRNGKey(0)
    kx, kp = jax.random.split(key)
    x = jax.random.normal(kx, (B, S, D), dtype=jnp.float32)
    # padding mask: per-sequence valid lengths
    lengths = jnp.array([8, 5, 8, 3], dtype=jnp.int32)
    mask = (jnp.arange(S)[None, None, :] < lengths[:, None, None]).astype(jnp.float32)

    params = init_params(kp, D, F, N_LAYERS)

    out = encoder_pallas(x, mask, params, bt=BT)
    jax.block_until_ready(out)

    ref = encoder_ref(x, mask, params)
    assert out.shape == (B, S, D) and out.dtype == jnp.float32
    err = float(jnp.max(jnp.abs(out - ref)))
    assert jnp.allclose(out, ref, atol=2e-3, rtol=2e-3), err
    print("KERNEL_OK")
</pallas_src>

<mosaic_0001>
module attributes {stable_mosaic.version = 11 : i64} {
  func.func @kernel(%arg0: i32, %arg1: i32, %arg2: memref<16x32xf32, #tpu.memory_space<vmem>>, %arg3: memref<2x1x8xf32, #tpu.memory_space<vmem>>, %arg4: memref<1x1x32xf32, #tpu.memory_space<vmem>>, %arg5: memref<1x1x32xf32, #tpu.memory_space<vmem>>, %arg6: memref<1x32x96xf32, #tpu.memory_space<vmem>>, %arg7: memref<1x1x96xf32, #tpu.memory_space<vmem>>, %arg8: memref<1x32x32xf32, #tpu.memory_space<vmem>>, %arg9: memref<1x1x32xf32, #tpu.memory_space<vmem>>, %arg10: memref<1x1x32xf32, #tpu.memory_space<vmem>>, %arg11: memref<1x1x32xf32, #tpu.memory_space<vmem>>, %arg12: memref<1x32x64xf32, #tpu.memory_space<vmem>>, %arg13: memref<1x1x64xf32, #tpu.memory_space<vmem>>, %arg14: memref<1x64x32xf32, #tpu.memory_space<vmem>>, %arg15: memref<1x1x32xf32, #tpu.memory_space<vmem>>, %arg16: memref<1x32xf32, #tpu.memory_space<vmem>>, %arg17: memref<1x32xf32, #tpu.memory_space<vmem>>, %arg18: memref<16x32xf32, #tpu.memory_space<vmem>>, %arg19: memref<16x32xf32, #tpu.memory_space<vmem>>) attributes {dimension_semantics = [#tpu.dimension_semantics<parallel>, #tpu.dimension_semantics<arbitrary>], iteration_bounds = array<i64: 2, 2>, scalar_prefetch = 0 : i64, scratch_operands = 1 : i64, tpu.core_type = #tpu.core_type<tc>, window_params = [{transform_indices = @transform_0, window_bounds = array<i64: 16, 32>}, {transform_indices = @transform_1, window_bounds = array<i64: 2, 1, 8>}, {transform_indices = @transform_2, window_bounds = array<i64: 1, 1, 32>}, {transform_indices = @transform_3, window_bounds = array<i64: 1, 1, 32>}, {transform_indices = @transform_4, window_bounds = array<i64: 1, 32, 96>}, {transform_indices = @transform_5, window_bounds = array<i64: 1, 1, 96>}, {transform_indices = @transform_6, window_bounds = array<i64: 1, 32, 32>}, {transform_indices = @transform_7, window_bounds = array<i64: 1, 1, 32>}, {transform_indices = @transform_8, window_bounds = array<i64: 1, 1, 32>}, {transform_indices = @transform_9, window_bounds = array<i64: 1, 1, 32>}, {transform_indices = @transform_10, window_bounds = array<i64: 1, 32, 64>}, {transform_indices = @transform_11, window_bounds = array<i64: 1, 1, 64>}, {transform_indices = @transform_12, window_bounds = array<i64: 1, 64, 32>}, {transform_indices = @transform_13, window_bounds = array<i64: 1, 1, 32>}, {pipeline_mode = #tpu.pipeline_mode<synchronous>, transform_indices = @transform_14, window_bounds = array<i64: 1, 32>}, {pipeline_mode = #tpu.pipeline_mode<synchronous>, transform_indices = @transform_15, window_bounds = array<i64: 1, 32>}, {transform_indices = @transform_16, window_bounds = array<i64: 16, 32>}]} {
    %c0_i32 = arith.constant 0 : i32
    %0 = arith.cmpi eq, %arg1, %c0_i32 : i32
    %1 = arith.extui %0 : i1 to i32
    %c0_i32_0 = arith.constant 0 : i32
    %2 = arith.cmpi ne, %1, %c0_i32_0 : i32
    scf.if %2 {
      %c0_100 = arith.constant 0 : index
      %c0_101 = arith.constant 0 : index
      %243 = vector.load %arg2[%c0_100, %c0_101] : memref<16x32xf32, #tpu.memory_space<vmem>>, vector<16x32xf32>
      %c0_102 = arith.constant 0 : index
      %c0_103 = arith.constant 0 : index
      %244 = vector.load %arg19[%c0_102, %c0_103] : memref<16x32xf32, #tpu.memory_space<vmem>>, vector<16x32xf32>
      tpu.vector_store %arg19[%c0_102, %c0_103], %243 {strides = array<i32>} : memref<16x32xf32, #tpu.memory_space<vmem>>, vector<16x32xf32>,
    } else {
    }
    %c0 = arith.constant 0 : index
    %c0_1 = arith.constant 0 : index
    %3 = vector.load %arg19[%c0, %c0_1] : memref<16x32xf32, #tpu.memory_space<vmem>>, vector<16x32xf32>
    %c0_2 = arith.constant 0 : index
    %c0_3 = arith.constant 0 : index
    %c0_4 = arith.constant 0 : index
    %4 = vector.load %arg4[%c0_2, %c0_3, %c0_4] : memref<1x1x32xf32, #tpu.memory_space<vmem>>, vector<1x1x32xf32>
    %5 = vector.shape_cast %4 : vector<1x1x32xf32> to vector<1x32xf32>
    %c0_5 = arith.constant 0 : index
    %c0_6 = arith.constant 0 : index
    %c0_7 = arith.constant 0 : index
    %6 = vector.load %arg5[%c0_5, %c0_6, %c0_7] : memref<1x1x32xf32, #tpu.memory_space<vmem>>, vector<1x1x32xf32>
    %7 = vector.shape_cast %6 : vector<1x1x32xf32> to vector<1x32xf32>
    %cst = arith.constant dense<0.000000e+00> : vector<16xf32>
    %8 = vector.multi_reduction <add>, %3, %cst [1] : vector<16x32xf32> to vector<16xf32>
    %9 = vector.shape_cast %8 : vector<16xf32> to vector<16x1xf32>
    %cst_8 = arith.constant 3.200000e+01 : f32
    %10 = vector.broadcast %cst_8 : f32 to vector<16x1xf32>
    %11 = arith.divf %9, %10 : vector<16x1xf32>
    %12 = vector.broadcast %11 : vector<16x1xf32> to vector<16x32xf32>
    %13 = arith.subf %3, %12 : vector<16x32xf32>
    %14 = arith.mulf %13, %13 : vector<16x32xf32>
    %cst_9 = arith.constant dense<0.000000e+00> : vector<16xf32>
    %15 = vector.multi_reduction <add>, %14, %cst_9 [1] : vector<16x32xf32> to vector<16xf32>
    %16 = vector.shape_cast %15 : vector<16xf32> to vector<16x1xf32>
    %cst_10 = arith.constant 0.0322580636 : f32
    %17 = vector.broadcast %cst_10 : f32 to vector<16x1xf32>
    %18 = arith.mulf %16, %17 : vector<16x1xf32>
    %19 = math.sqrt %18 : vector<16x1xf32>
    %20 = vector.broadcast %11 : vector<16x1xf32> to vector<16x32xf32>
    %21 = arith.subf %3, %20 : vector<16x32xf32>
    %22 = vector.broadcast %5 : vector<1x32xf32> to vector<16x32xf32>
    %23 = arith.mulf %22, %21 : vector<16x32xf32>
    %cst_11 = arith.constant 9.99999997E-7 : f32
    %24 = vector.broadcast %cst_11 : f32 to vector<16x1xf32>
    %25 = arith.addf %19, %24 : vector<16x1xf32>
    %26 = vector.broadcast %25 : vector<16x1xf32> to vector<16x32xf32>
    %27 = arith.divf %23, %26 : vector<16x32xf32>
    %28 = vector.broadcast %7 : vector<1x32xf32> to vector<16x32xf32>
    %29 = arith.addf %27, %28 : vector<16x32xf32>
    %c0_12 = arith.constant 0 : index
    %c0_13 = arith.constant 0 : index
    %c0_14 = arith.constant 0 : index
    %30 = vector.load %arg6[%c0_12, %c0_13, %c0_14] : memref<1x32x96xf32, #tpu.memory_space<vmem>>, vector<1x32x96xf32>
    %31 = vector.shape_cast %30 : vector<1x32x96xf32> to vector<32x96xf32>
    %cst_15 = arith.constant dense<0.000000e+00> : vector<16x96xf32>
    %32 = tpu.matmul %29, %31, %cst_15 {dimension_numbers = #tpu.dot_dimension_numbers<[1], [0], [0], [1], [0, 0, 1, 1], [], []>} : vector<16x32xf32>, vector<32x96xf32>, vector<16x96xf32> -> vector<16x96xf32>
    %c0_16 = arith.constant 0 : index
    %c0_17 = arith.constant 0 : index
    %c0_18 = arith.constant 0 : index
    %33 = vector.load %arg7[%c0_16, %c0_17, %c0_18] : memref<1x1x96xf32, #tpu.memory_space<vmem>>, vector<1x1x96xf32>
    %34 = vector.shape_cast %33 : vector<1x1x96xf32> to vector<1x96xf32>
    %35 = vector.broadcast %34 : vector<1x96xf32> to vector<16x96xf32>
    %36 = arith.addf %32, %35 : vector<16x96xf32>
    %c0_19 = arith.constant 0 : index
    %c0_20 = arith.constant 0 : index
    %c0_21 = arith.constant 0 : index
    %37 = vector.load %arg3[%c0_19, %c0_20, %c0_21] : memref<2x1x8xf32, #tpu.memory_space<vmem>>, vector<1x1x8xf32>
    %38 = vector.shape_cast %37 : vector<1x1x8xf32> to vector<1x8xf32>
    %39 = vector.extract_strided_slice %36 {offsets = [0, 0], sizes = [8, 8], strides = [1, 1]} : vector<16x96xf32> to vector<8x8xf32>
    %40 = vector.extract_strided_slice %36 {offsets = [0, 32], sizes = [8, 8], strides = [1, 1]} : vector<16x96xf32> to vector<8x8xf32>
    %41 = vector.extract_strided_slice %36 {offsets = [0, 64], sizes = [8, 8], strides = [1, 1]} : vector<16x96xf32> to vector<8x8xf32>
    %cst_22 = arith.constant dense<0.000000e+00> : vector<8x8xf32>
    %42 = tpu.matmul %39, %40, %cst_22 {dimension_numbers = #tpu.dot_dimension_numbers<[1], [1], [0], [0], [0, 0, 1, 0], [], []>} : vector<8x8xf32>, vector<8x8xf32>, vector<8x8xf32> -> vector<8x8xf32>
    %cst_23 = arith.constant 0.353553385 : f32
    %43 = vector.broadcast %cst_23 : f32 to vector<8x8xf32>
    %44 = arith.mulf %42, %43 : vector<8x8xf32>
    %45 = vector.broadcast %38 : vector<1x8xf32> to vector<8x8xf32>
    %46 = arith.addf %44, %45 : vector<8x8xf32>
    %cst_24 = arith.constant dense<0xFF800000> : vector<8xf32>
    %47 = vector.multi_reduction <maximumf>, %46, %cst_24 [1] : vector<8x8xf32> to vector<8xf32>
    %48 = vector.shape_cast %47 : vector<8xf32> to vector<8x1xf32>
    %49 = vector.broadcast %48 : vector<8x1xf32> to vector<8x8xf32>
    %50 = arith.subf %46, %49 : vector<8x8xf32>
    %51 = math.exp %50 : vector<8x8xf32>
    %cst_25 = arith.constant dense<0.000000e+00> : vector<8xf32>
    %52 = vector.multi_reduction <add>, %51, %cst_25 [1] : vector<8x8xf32> to vector<8xf32>
    %53 = vector.shape_cast %52 : vector<8xf32> to vector<8x1xf32>
    %54 = vector.broadcast %53 : vector<8x1xf32> to vector<8x8xf32>
    %55 = arith.divf %51, %54 : vector<8x8xf32>
    %cst_26 = arith.constant dense<0.000000e+00> : vector<8x8xf32>
    %56 = tpu.matmul %55, %41, %cst_26 {dimension_numbers = #tpu.dot_dimension_numbers<[1], [0], [0], [1], [0, 0, 1, 1], [], []>} : vector<8x8xf32>, vector<8x8xf32>, vector<8x8xf32> -> vector<8x8xf32>
    %57 = vector.extract_strided_slice %36 {offsets = [0, 8], sizes = [8, 8], strides = [1, 1]} : vector<16x96xf32> to vector<8x8xf32>
    %58 = vector.extract_strided_slice %36 {offsets = [0, 40], sizes = [8, 8], strides = [1, 1]} : vector<16x96xf32> to vector<8x8xf32>
    %59 = vector.extract_strided_slice %36 {offsets = [0, 72], sizes = [8, 8], strides = [1, 1]} : vector<16x96xf32> to vector<8x8xf32>
    %cst_27 = arith.constant dense<0.000000e+00> : vector<8x8xf32>
    %60 = tpu.matmul %57, %58, %cst_27 {dimension_numbers = #tpu.dot_dimension_numbers<[1], [1], [0], [0], [0, 0, 1, 0], [], []>} : vector<8x8xf32>, vector<8x8xf32>, vector<8x8xf32> -> vector<8x8xf32>
    %cst_28 = arith.constant 0.353553385 : f32
    %61 = vector.broadcast %cst_28 : f32 to vector<8x8xf32>
    %62 = arith.mulf %60, %61 : vector<8x8xf32>
    %63 = vector.broadcast %38 : vector<1x8xf32> to vector<8x8xf32>
    %64 = arith.addf %62, %63 : vector<8x8xf32>
    %cst_29 = arith.constant dense<0xFF800000> : vector<8xf32>
    %65 = vector.multi_reduction <maximumf>, %64, %cst_29 [1] : vector<8x8xf32> to vector<8xf32>
    %66 = vector.shape_cast %65 : vector<8xf32> to vector<8x1xf32>
    %67 = vector.broadcast %66 : vector<8x1xf32> to vector<8x8xf32>
    %68 = arith.subf %64, %67 : vector<8x8xf32>
    %69 = math.exp %68 : vector<8x8xf32>
    %cst_30 = arith.constant dense<0.000000e+00> : vector<8xf32>
    %70 = vector.multi_reduction <add>, %69, %cst_30 [1] : vector<8x8xf32> to vector<8xf32>
    %71 = vector.shape_cast %70 : vector<8xf32> to vector<8x1xf32>
    %72 = vector.broadcast %71 : vector<8x1xf32> to vector<8x8xf32>
    %73 = arith.divf %69, %72 : vector<8x8xf32>
    %cst_31 = arith.constant dense<0.000000e+00> : vector<8x8xf32>
    %74 = tpu.matmul %73, %59, %cst_31 {dimension_numbers = #tpu.dot_dimension_numbers<[1], [0], [0], [1], [0, 0, 1, 1], [], []>} : vector<8x8xf32>, vector<8x8xf32>, vector<8x8xf32> -> vector<8x8xf32>
    %75 = vector.extract_strided_slice %36 {offsets = [0, 16], sizes = [8, 8], strides = [1, 1]} : vector<16x96xf32> to vector<8x8xf32>
    %76 = vector.extract_strided_slice %36 {offsets = [0, 48], sizes = [8, 8], strides = [1, 1]} : vector<16x96xf32> to vector<8x8xf32>
    %77 = vector.extract_strided_slice %36 {offsets = [0, 80], sizes = [8, 8], strides = [1, 1]} : vector<16x96xf32> to vector<8x8xf32>
    %cst_32 = arith.constant dense<0.000000e+00> : vector<8x8xf32>
    %78 = tpu.matmul %75, %76, %cst_32 {dimension_numbers = #tpu.dot_dimension_numbers<[1], [1], [0], [0], [0, 0, 1, 0], [], []>} : vector<8x8xf32>, vector<8x8xf32>, vector<8x8xf32> -> vector<8x8xf32>
    %cst_33 = arith.constant 0.353553385 : f32
    %79 = vector.broadcast %cst_33 : f32 to vector<8x8xf32>
    %80 = arith.mulf %78, %79 : vector<8x8xf32>
    %81 = vector.broadcast %38 : vector<1x8xf32> to vector<8x8xf32>
    %82 = arith.addf %80, %81 : vector<8x8xf32>
    %cst_34 = arith.constant dense<0xFF800000> : vector<8xf32>
    %83 = vector.multi_reduction <maximumf>, %82, %cst_34 [1] : vector<8x8xf32> to vector<8xf32>
    %84 = vector.shape_cast %83 : vector<8xf32> to vector<8x1xf32>
    %85 = vector.broadcast %84 : vector<8x1xf32> to vector<8x8xf32>
    %86 = arith.subf %82, %85 : vector<8x8xf32>
    %87 = math.exp %86 : vector<8x8xf32>
    %cst_35 = arith.constant dense<0.000000e+00> : vector<8xf32>
    %88 = vector.multi_reduction <add>, %87, %cst_35 [1] : vector<8x8xf32> to vector<8xf32>
    %89 = vector.shape_cast %88 : vector<8xf32> to vector<8x1xf32>
    %90 = vector.broadcast %89 : vector<8x1xf32> to vector<8x8xf32>
    %91 = arith.divf %87, %90 : vector<8x8xf32>
    %cst_36 = arith.constant dense<0.000000e+00> : vector<8x8xf32>
    %92 = tpu.matmul %91, %77, %cst_36 {dimension_numbers = #tpu.dot_dimension_numbers<[1], [0], [0], [1], [0, 0, 1, 1], [], []>} : vector<8x8xf32>, vector<8x8xf32>, vector<8x8xf32> -> vector<8x8xf32>
    %93 = vector.extract_strided_slice %36 {offsets = [0, 24], sizes = [8, 8], strides = [1, 1]} : vector<16x96xf32> to vector<8x8xf32>
    %94 = vector.extract_strided_slice %36 {offsets = [0, 56], sizes = [8, 8], strides = [1, 1]} : vector<16x96xf32> to vector<8x8xf32>
    %95 = vector.extract_strided_slice %36 {offsets = [0, 88], sizes = [8, 8], strides = [1, 1]} : vector<16x96xf32> to vector<8x8xf32>
    %cst_37 = arith.constant dense<0.000000e+00> : vector<8x8xf32>
    %96 = tpu.matmul %93, %94, %cst_37 {dimension_numbers = #tpu.dot_dimension_numbers<[1], [1], [0], [0], [0, 0, 1, 0], [], []>} : vector<8x8xf32>, vector<8x8xf32>, vector<8x8xf32> -> vector<8x8xf32>
    %cst_38 = arith.constant 0.353553385 : f32
    %97 = vector.broadcast %cst_38 : f32 to vector<8x8xf32>
    %98 = arith.mulf %96, %97 : vector<8x8xf32>
    %99 = vector.broadcast %38 : vector<1x8xf32> to vector<8x8xf32>
    %100 = arith.addf %98, %99 : vector<8x8xf32>
    %cst_39 = arith.constant dense<0xFF800000> : vector<8xf32>
    %101 = vector.multi_reduction <maximumf>, %100, %cst_39 [1] : vector<8x8xf32> to vector<8xf32>
    %102 = vector.shape_cast %101 : vector<8xf32> to vector<8x1xf32>
    %103 = vector.broadcast %102 : vector<8x1xf32> to vector<8x8xf32>
    %104 = arith.subf %100, %103 : vector<8x8xf32>
    %105 = math.exp %104 : vector<8x8xf32>
    %cst_40 = arith.constant dense<0.000000e+00> : vector<8xf32>
    %106 = vector.multi_reduction <add>, %105, %cst_40 [1] : vector<8x8xf32> to vector<8xf32>
    %107 = vector.shape_cast %106 : vector<8xf32> to vector<8x1xf32>
    %108 = vector.broadcast %107 : vector<8x1xf32> to vector<8x8xf32>
    %109 = arith.divf %105, %108 : vector<8x8xf32>
    %cst_41 = arith.constant dense<0.000000e+00> : vector<8x8xf32>
    %110 = tpu.matmul %109, %95, %cst_41 {dimension_numbers = #tpu.dot_dimension_numbers<[1], [0], [0], [1], [0, 0, 1, 1], [], []>} : vector<8x8xf32>, vector<8x8xf32>, vector<8x8xf32> -> vector<8x8xf32>
    %111 = tpu.concatenate %56, %74, %92, %110 in 1 : vector<8x8xf32>, vector<8x8xf32>, vector<8x8xf32>, vector<8x8xf32> -> vector<8x32xf32>
    %c1 = arith.constant 1 : index
    %c0_42 = arith.constant 0 : index
    %c0_43 = arith.constant 0 : index
    %112 = vector.load %arg3[%c1, %c0_42, %c0_43] : memref<2x1x8xf32, #tpu.memory_space<vmem>>, vector<1x1x8xf32>
    %113 = vector.shape_cast %112 : vector<1x1x8xf32> to vector<1x8xf32>
    %114 = vector.extract_strided_slice %36 {offsets = [8, 0], sizes = [8, 8], strides = [1, 1]} : vector<16x96xf32> to vector<8x8xf32>
    %115 = vector.extract_strided_slice %36 {offsets = [8, 32], sizes = [8, 8], strides = [1, 1]} : vector<16x96xf32> to vector<8x8xf32>
    %116 = vector.extract_strided_slice %36 {offsets = [8, 64], sizes = [8, 8], strides = [1, 1]} : vector<16x96xf32> to vector<8x8xf32>
    %cst_44 = arith.constant dense<0.000000e+00> : vector<8x8xf32>
    %117 = tpu.matmul %114, %115, %cst_44 {dimension_numbers = #tpu.dot_dimension_numbers<[1], [1], [0], [0], [0, 0, 1, 0], [], []>} : vector<8x8xf32>, vector<8x8xf32>, vector<8x8xf32> -> vector<8x8xf32>
    %cst_45 = arith.constant 0.353553385 : f32
    %118 = vector.broadcast %cst_45 : f32 to vector<8x8xf32>
    %119 = arith.mulf %117, %118 : vector<8x8xf32>
    %120 = vector.broadcast %113 : vector<1x8xf32> to vector<8x8xf32>
    %121 = arith.addf %119, %120 : vector<8x8xf32>
    %cst_46 = arith.constant dense<0xFF800000> : vector<8xf32>
    %122 = vector.multi_reduction <maximumf>, %121, %cst_46 [1] : vector<8x8xf32> to vector<8xf32>
    %123 = vector.shape_cast %122 : vector<8xf32> to vector<8x1xf32>
    %124 = vector.broadcast %123 : vector<8x1xf32> to vector<8x8xf32>
    %125 = arith.subf %121, %124 : vector<8x8xf32>
    %126 = math.exp %125 : vector<8x8xf32>
    %cst_47 = arith.constant dense<0.000000e+00> : vector<8xf32>
    %127 = vector.multi_reduction <add>, %126, %cst_47 [1] : vector<8x8xf32> to vector<8xf32>
    %128 = vector.shape_cast %127 : vector<8xf32> to vector<8x1xf32>
    %129 = vector.broadcast %128 : vector<8x1xf32> to vector<8x8xf32>
    %130 = arith.divf %126, %129 : vector<8x8xf32>
    %cst_48 = arith.constant dense<0.000000e+00> : vector<8x8xf32>
    %131 = tpu.matmul %130, %116, %cst_48 {dimension_numbers = #tpu.dot_dimension_numbers<[1], [0], [0], [1], [0, 0, 1, 1], [], []>} : vector<8x8xf32>, vector<8x8xf32>, vector<8x8xf32> -> vector<8x8xf32>
    %132 = vector.extract_strided_slice %36 {offsets = [8, 8], sizes = [8, 8], strides = [1, 1]} : vector<16x96xf32> to vector<8x8xf32>
    %133 = vector.extract_strided_slice %36 {offsets = [8, 40], sizes = [8, 8], strides = [1, 1]} : vector<16x96xf32> to vector<8x8xf32>
    %134 = vector.extract_strided_slice %36 {offsets = [8, 72], sizes = [8, 8], strides = [1, 1]} : vector<16x96xf32> to vector<8x8xf32>
    %cst_49 = arith.constant dense<0.000000e+00> : vector<8x8xf32>
    %135 = tpu.matmul %132, %133, %cst_49 {dimension_numbers = #tpu.dot_dimension_numbers<[1], [1], [0], [0], [0, 0, 1, 0], [], []>} : vector<8x8xf32>, vector<8x8xf32>, vector<8x8xf32> -> vector<8x8xf32>
    %cst_50 = arith.constant 0.353553385 : f32
    %136 = vector.broadcast %cst_50 : f32 to vector<8x8xf32>
    %137 = arith.mulf %135, %136 : vector<8x8xf32>
    %138 = vector.broadcast %113 : vector<1x8xf32> to vector<8x8xf32>
    %139 = arith.addf %137, %138 : vector<8x8xf32>
    %cst_51 = arith.constant dense<0xFF800000> : vector<8xf32>
    %140 = vector.multi_reduction <maximumf>, %139, %cst_51 [1] : vector<8x8xf32> to vector<8xf32>
    %141 = vector.shape_cast %140 : vector<8xf32> to vector<8x1xf32>
    %142 = vector.broadcast %141 : vector<8x1xf32> to vector<8x8xf32>
    %143 = arith.subf %139, %142 : vector<8x8xf32>
    %144 = math.exp %143 : vector<8x8xf32>
    %cst_52 = arith.constant dense<0.000000e+00> : vector<8xf32>
    %145 = vector.multi_reduction <add>, %144, %cst_52 [1] : vector<8x8xf32> to vector<8xf32>
    %146 = vector.shape_cast %145 : vector<8xf32> to vector<8x1xf32>
    %147 = vector.broadcast %146 : vector<8x1xf32> to vector<8x8xf32>
    %148 = arith.divf %144, %147 : vector<8x8xf32>
    %cst_53 = arith.constant dense<0.000000e+00> : vector<8x8xf32>
    %149 = tpu.matmul %148, %134, %cst_53 {dimension_numbers = #tpu.dot_dimension_numbers<[1], [0], [0], [1], [0, 0, 1, 1], [], []>} : vector<8x8xf32>, vector<8x8xf32>, vector<8x8xf32> -> vector<8x8xf32>
    %150 = vector.extract_strided_slice %36 {offsets = [8, 16], sizes = [8, 8], strides = [1, 1]} : vector<16x96xf32> to vector<8x8xf32>
    %151 = vector.extract_strided_slice %36 {offsets = [8, 48], sizes = [8, 8], strides = [1, 1]} : vector<16x96xf32> to vector<8x8xf32>
    %152 = vector.extract_strided_slice %36 {offsets = [8, 80], sizes = [8, 8], strides = [1, 1]} : vector<16x96xf32> to vector<8x8xf32>
    %cst_54 = arith.constant dense<0.000000e+00> : vector<8x8xf32>
    %153 = tpu.matmul %150, %151, %cst_54 {dimension_numbers = #tpu.dot_dimension_numbers<[1], [1], [0], [0], [0, 0, 1, 0], [], []>} : vector<8x8xf32>, vector<8x8xf32>, vector<8x8xf32> -> vector<8x8xf32>
    %cst_55 = arith.constant 0.353553385 : f32
    %154 = vector.broadcast %cst_55 : f32 to vector<8x8xf32>
    %155 = arith.mulf %153, %154 : vector<8x8xf32>
    %156 = vector.broadcast %113 : vector<1x8xf32> to vector<8x8xf32>
    %157 = arith.addf %155, %156 : vector<8x8xf32>
    %cst_56 = arith.constant dense<0xFF800000> : vector<8xf32>
    %158 = vector.multi_reduction <maximumf>, %157, %cst_56 [1] : vector<8x8xf32> to vector<8xf32>
    %159 = vector.shape_cast %158 : vector<8xf32> to vector<8x1xf32>
    %160 = vector.broadcast %159 : vector<8x1xf32> to vector<8x8xf32>
    %161 = arith.subf %157, %160 : vector<8x8xf32>
    %162 = math.exp %161 : vector<8x8xf32>
    %cst_57 = arith.constant dense<0.000000e+00> : vector<8xf32>
    %163 = vector.multi_reduction <add>, %162, %cst_57 [1] : vector<8x8xf32> to vector<8xf32>
    %164 = vector.shape_cast %163 : vector<8xf32> to vector<8x1xf32>
    %165 = vector.broadcast %164 : vector<8x1xf32> to vector<8x8xf32>
    %166 = arith.divf %162, %165 : vector<8x8xf32>
    %cst_58 = arith.constant dense<0.000000e+00> : vector<8x8xf32>
    %167 = tpu.matmul %166, %152, %cst_58 {dimension_numbers = #tpu.dot_dimension_numbers<[1], [0], [0], [1], [0, 0, 1, 1], [], []>} : vector<8x8xf32>, vector<8x8xf32>, vector<8x8xf32> -> vector<8x8xf32>
    %168 = vector.extract_strided_slice %36 {offsets = [8, 24], sizes = [8, 8], strides = [1, 1]} : vector<16x96xf32> to vector<8x8xf32>
    %169 = vector.extract_strided_slice %36 {offsets = [8, 56], sizes = [8, 8], strides = [1, 1]} : vector<16x96xf32> to vector<8x8xf32>
    %170 = vector.extract_strided_slice %36 {offsets = [8, 88], sizes = [8, 8], strides = [1, 1]} : vector<16x96xf32> to vector<8x8xf32>
    %cst_59 = arith.constant dense<0.000000e+00> : vector<8x8xf32>
    %171 = tpu.matmul %168, %169, %cst_59 {dimension_numbers = #tpu.dot_dimension_numbers<[1], [1], [0], [0], [0, 0, 1, 0], [], []>} : vector<8x8xf32>, vector<8x8xf32>, vector<8x8xf32> -> vector<8x8xf32>
    %cst_60 = arith.constant 0.353553385 : f32
    %172 = vector.broadcast %cst_60 : f32 to vector<8x8xf32>
    %173 = arith.mulf %171, %172 : vector<8x8xf32>
    %174 = vector.broadcast %113 : vector<1x8xf32> to vector<8x8xf32>
    %175 = arith.addf %173, %174 : vector<8x8xf32>
    %cst_61 = arith.constant dense<0xFF800000> : vector<8xf32>
    %176 = vector.multi_reduction <maximumf>, %175, %cst_61 [1] : vector<8x8xf32> to vector<8xf32>
    %177 = vector.shape_cast %176 : vector<8xf32> to vector<8x1xf32>
    %178 = vector.broadcast %177 : vector<8x1xf32> to vector<8x8xf32>
    %179 = arith.subf %175, %178 : vector<8x8xf32>
    %180 = math.exp %179 : vector<8x8xf32>
    %cst_62 = arith.constant dense<0.000000e+00> : vector<8xf32>
    %181 = vector.multi_reduction <add>, %180, %cst_62 [1] : vector<8x8xf32> to vector<8xf32>
    %182 = vector.shape_cast %181 : vector<8xf32> to vector<8x1xf32>
    %183 = vector.broadcast %182 : vector<8x1xf32> to vector<8x8xf32>
    %184 = arith.divf %180, %183 : vector<8x8xf32>
    %cst_63 = arith.constant dense<0.000000e+00> : vector<8x8xf32>
    %185 = tpu.matmul %184, %170, %cst_63 {dimension_numbers = #tpu.dot_dimension_numbers<[1], [0], [0], [1], [0, 0, 1, 1], [], []>} : vector<8x8xf32>, vector<8x8xf32>, vector<8x8xf32> -> vector<8x8xf32>
    %186 = tpu.concatenate %131, %149, %167, %185 in 1 : vector<8x8xf32>, vector<8x8xf32>, vector<8x8xf32>, vector<8x8xf32> -> vector<8x32xf32>
    %187 = tpu.concatenate %111, %186 in 0 : vector<8x32xf32>, vector<8x32xf32> -> vector<16x32xf32>
    %c0_64 = arith.constant 0 : index
    %c0_65 = arith.constant 0 : index
    %c0_66 = arith.constant 0 : index
    %188 = vector.load %arg8[%c0_64, %c0_65, %c0_66] : memref<1x32x32xf32, #tpu.memory_space<vmem>>, vector<1x32x32xf32>
    %189 = vector.shape_cast %188 : vector<1x32x32xf32> to vector<32x32xf32>
    %cst_67 = arith.constant dense<0.000000e+00> : vector<16x32xf32>
    %190 = tpu.matmul %187, %189, %cst_67 {dimension_numbers = #tpu.dot_dimension_numbers<[1], [0], [0], [1], [0, 0, 1, 1], [], []>} : vector<16x32xf32>, vector<32x32xf32>, vector<16x32xf32> -> vector<16x32xf32>
    %c0_68 = arith.constant 0 : index
    %c0_69 = arith.constant 0 : index
    %c0_70 = arith.constant 0 : index
    %191 = vector.load %arg9[%c0_68, %c0_69, %c0_70] : memref<1x1x32xf32, #tpu.memory_space<vmem>>, vector<1x1x32xf32>
    %192 = vector.shape_cast %191 : vector<1x1x32xf32> to vector<1x32xf32>
    %193 = vector.broadcast %192 : vector<1x32xf32> to vector<16x32xf32>
    %194 = arith.addf %190, %193 : vector<16x32xf32>
    %195 = arith.addf %3, %194 : vector<16x32xf32>
    %c0_71 = arith.constant 0 : index
    %c0_72 = arith.constant 0 : index
    %c0_73 = arith.constant 0 : index
    %196 = vector.load %arg10[%c0_71, %c0_72, %c0_73] : memref<1x1x32xf32, #tpu.memory_space<vmem>>, vector<1x1x32xf32>
    %197 = vector.shape_cast %196 : vector<1x1x32xf32> to vector<1x32xf32>
    %c0_74 = arith.constant 0 : index
    %c0_75 = arith.constant 0 : index
    %c0_76 = arith.constant 0 : index
    %198 = vector.load %arg11[%c0_74, %c0_75, %c0_76] : memref<1x1x32xf32, #tpu.memory_space<vmem>>, vector<1x1x32xf32>
    %199 = vector.shape_cast %198 : vector<1x1x32xf32> to vector<1x32xf32>
    %cst_77 = arith.constant dense<0.000000e+00> : vector<16xf32>
    %200 = vector.multi_reduction <add>, %195, %cst_77 [1] : vector<16x32xf32> to vector<16xf32>
    %201 = vector.shape_cast %200 : vector<16xf32> to vector<16x1xf32>
    %cst_78 = arith.constant 3.200000e+01 : f32
    %202 = vector.broadcast %cst_78 : f32 to vector<16x1xf32>
    %203 = arith.divf %201, %202 : vector<16x1xf32>
    %204 = vector.broadcast %203 : vector<16x1xf32> to vector<16x32xf32>
    %205 = arith.subf %195, %204 : vector<16x32xf32>
    %206 = arith.mulf %205, %205 : vector<16x32xf32>
    %cst_79 = arith.constant dense<0.000000e+00> : vector<16xf32>
    %207 = vector.multi_reduction <add>, %206, %cst_79 [1] : vector<16x32xf32> to vector<16xf32>
    %208 = vector.shape_cast %207 : vector<16xf32> to vector<16x1xf32>
    %cst_80 = arith.constant 0.0322580636 : f32
    %209 = vector.broadcast %cst_80 : f32 to vector<16x1xf32>
    %210 = arith.mulf %208, %209 : vector<16x1xf32>
    %211 = math.sqrt %210 : vector<16x1xf32>
    %212 = vector.broadcast %203 : vector<16x1xf32> to vector<16x32xf32>
    %213 = arith.subf %195, %212 : vector<16x32xf32>
    %214 = vector.broadcast %197 : vector<1x32xf32> to vector<16x32xf32>
    %215 = arith.mulf %214, %213 : vector<16x32xf32>
    %cst_81 = arith.constant 9.99999997E-7 : f32
    %216 = vector.broadcast %cst_81 : f32 to vector<16x1xf32>
    %217 = arith.addf %211, %216 : vector<16x1xf32>
    %218 = vector.broadcast %217 : vector<16x1xf32> to vector<16x32xf32>
    %219 = arith.divf %215, %218 : vector<16x32xf32>
    %220 = vector.broadcast %199 : vector<1x32xf32> to vector<16x32xf32>
    %221 = arith.addf %219, %220 : vector<16x32xf32>
    %c0_82 = arith.constant 0 : index
    %c0_83 = arith.constant 0 : index
    %c0_84 = arith.constant 0 : index
    %222 = vector.load %arg12[%c0_82, %c0_83, %c0_84] : memref<1x32x64xf32, #tpu.memory_space<vmem>>, vector<1x32x64xf32>
    %223 = vector.shape_cast %222 : vector<1x32x64xf32> to vector<32x64xf32>
    %cst_85 = arith.constant dense<0.000000e+00> : vector<16x64xf32>
    %224 = tpu.matmul %221, %223, %cst_85 {dimension_numbers = #tpu.dot_dimension_numbers<[1], [0], [0], [1], [0, 0, 1, 1], [], []>} : vector<16x32xf32>, vector<32x64xf32>, vector<16x64xf32> -> vector<16x64xf32>
    %c0_86 = arith.constant 0 : index
    %c0_87 = arith.constant 0 : index
    %c0_88 = arith.constant 0 : index
    %225 = vector.load %arg13[%c0_86, %c0_87, %c0_88] : memref<1x1x64xf32, #tpu.memory_space<vmem>>, vector<1x1x64xf32>
    %226 = vector.shape_cast %225 : vector<1x1x64xf32> to vector<1x64xf32>
    %227 = vector.broadcast %226 : vector<1x64xf32> to vector<16x64xf32>
    %228 = arith.addf %224, %227 : vector<16x64xf32>
    %cst_89 = arith.constant 0.000000e+00 : f32
    %229 = vector.broadcast %cst_89 : f32 to vector<16x64xf32>
    %230 = arith.maximumf %228, %229 : vector<16x64xf32>
    %c0_90 = arith.constant 0 : index
    %c0_91 = arith.constant 0 : index
    %c0_92 = arith.constant 0 : index
    %231 = vector.load %arg14[%c0_90, %c0_91, %c0_92] : memref<1x64x32xf32, #tpu.memory_space<vmem>>, vector<1x64x32xf32>
    %232 = vector.shape_cast %231 : vector<1x64x32xf32> to vector<64x32xf32>
    %cst_93 = arith.constant dense<0.000000e+00> : vector<16x32xf32>
    %233 = tpu.matmul %230, %232, %cst_93 {dimension_numbers = #tpu.dot_dimension_numbers<[1], [0], [0], [1], [0, 0, 1, 1], [], []>} : vector<16x64xf32>, vector<64x32xf32>, vector<16x32xf32> -> vector<16x32xf32>
    %234 = arith.addf %195, %233 : vector<16x32xf32>
    %c0_94 = arith.constant 0 : index
    %c0_95 = arith.constant 0 : index
    %c0_96 = arith.constant 0 : index
    %235 = vector.load %arg15[%c0_94, %c0_95, %c0_96] : memref<1x1x32xf32, #tpu.memory_space<vmem>>, vector<1x1x32xf32>
    %236 = vector.shape_cast %235 : vector<1x1x32xf32> to vector<1x32xf32>
    %237 = vector.broadcast %236 : vector<1x32xf32> to vector<16x32xf32>
    %238 = arith.addf %234, %237 : vector<16x32xf32>
    %c0_97 = arith.constant 0 : index
    %c0_98 = arith.constant 0 : index
    %239 = vector.load %arg19[%c0_97, %c0_98] : memref<16x32xf32, #tpu.memory_space<vmem>>, vector<16x32xf32>
    tpu.vector_store %arg19[%c0_97, %c0_98], %238 {strides = array<i32>} : memref<16x32xf32, #tpu.memory_space<vmem>>, vector<16x32xf32>,
    %c1_i32 = arith.constant 1 : i32
    %240 = arith.cmpi eq, %arg1, %c1_i32 : i32
    %241 = arith.extui %240 : i1 to i32
    %c0_i32_99 = arith.constant 0 : i32
    %242 = arith.cmpi ne, %241, %c0_i32_99 : i32
    scf.if %242 {
      %c0_100 = arith.constant 0 : index
      %c0_101 = arith.constant 0 : index
      %243 = vector.load %arg16[%c0_100, %c0_101] : memref<1x32xf32, #tpu.memory_space<vmem>>, vector<1x32xf32>
      %c0_102 = arith.constant 0 : index
      %c0_103 = arith.constant 0 : index
      %244 = vector.load %arg17[%c0_102, %c0_103] : memref<1x32xf32, #tpu.memory_space<vmem>>, vector<1x32xf32>
      %cst_104 = arith.constant dense<0.000000e+00> : vector<16xf32>
      %245 = vector.multi_reduction <add>, %238, %cst_104 [1] : vector<16x32xf32> to vector<16xf32>
      %246 = vector.shape_cast %245 : vector<16xf32> to vector<16x1xf32>
      %cst_105 = arith.constant 3.200000e+01 : f32
      %247 = vector.broadcast %cst_105 : f32 to vector<16x1xf32>
      %248 = arith.divf %246, %247 : vector<16x1xf32>
      %249 = vector.broadcast %248 : vector<16x1xf32> to vector<16x32xf32>
      %250 = arith.subf %238, %249 : vector<16x32xf32>
      %251 = arith.mulf %250, %250 : vector<16x32xf32>
      %cst_106 = arith.constant dense<0.000000e+00> : vector<16xf32>
      %252 = vector.multi_reduction <add>, %251, %cst_106 [1] : vector<16x32xf32> to vector<16xf32>
      %253 = vector.shape_cast %252 : vector<16xf32> to vector<16x1xf32>
      %cst_107 = arith.constant 0.0322580636 : f32
      %254 = vector.broadcast %cst_107 : f32 to vector<16x1xf32>
      %255 = arith.mulf %253, %254 : vector<16x1xf32>
      %256 = math.sqrt %255 : vector<16x1xf32>
      %257 = vector.broadcast %248 : vector<16x1xf32> to vector<16x32xf32>
      %258 = arith.subf %238, %257 : vector<16x32xf32>
      %259 = vector.broadcast %243 : vector<1x32xf32> to vector<16x32xf32>
      %260 = arith.mulf %259, %258 : vector<16x32xf32>
      %cst_108 = arith.constant 9.99999997E-7 : f32
      %261 = vector.broadcast %cst_108 : f32 to vector<16x1xf32>
      %262 = arith.addf %256, %261 : vector<16x1xf32>
      %263 = vector.broadcast %262 : vector<16x1xf32> to vector<16x32xf32>
      %264 = arith.divf %260, %263 : vector<16x32xf32>
      %265 = vector.broadcast %244 : vector<1x32xf32> to vector<16x32xf32>
      %266 = arith.addf %264, %265 : vector<16x32xf32>
      %c0_109 = arith.constant 0 : index
      %c0_110 = arith.constant 0 : index
      %267 = vector.load %arg18[%c0_109, %c0_110] : memref<16x32xf32, #tpu.memory_space<vmem>>, vector<16x32xf32>
      tpu.vector_store %arg18[%c0_109, %c0_110], %266 {strides = array<i32>} : memref<16x32xf32, #tpu.memory_space<vmem>>, vector<16x32xf32>,
    } else {
    }
    return
  }
  func.func @transform_0(%arg0: i32, %arg1: i32) -> (i32, i32) {
    %c0_i32 = arith.constant 0 : i32
    %c0_i32_0 = arith.constant 0 : i32
    return %arg0, %c0_i32 : i32, i32
  }
  func.func @transform_1(%arg0: i32, %arg1: i32) -> (i32, i32, i32) {
    %c0_i32 = arith.constant 0 : i32
    %c0_i32_0 = arith.constant 0 : i32
    %c0_i32_1 = arith.constant 0 : i32
    return %arg0, %c0_i32, %c0_i32_0 : i32, i32, i32
  }
  func.func @transform_2(%arg0: i32, %arg1: i32) -> (i32, i32, i32) {
    %c0_i32 = arith.constant 0 : i32
    %c0_i32_0 = arith.constant 0 : i32
    %c0_i32_1 = arith.constant 0 : i32
    return %arg1, %c0_i32, %c0_i32_0 : i32, i32, i32
  }
  func.func @transform_3(%arg0: i32, %arg1: i32) -> (i32, i32, i32) {
    %c0_i32 = arith.constant 0 : i32
    %c0_i32_0 = arith.constant 0 : i32
    %c0_i32_1 = arith.constant 0 : i32
    return %arg1, %c0_i32, %c0_i32_0 : i32, i32, i32
  }
  func.func @transform_4(%arg0: i32, %arg1: i32) -> (i32, i32, i32) {
    %c0_i32 = arith.constant 0 : i32
    %c0_i32_0 = arith.constant 0 : i32
    %c0_i32_1 = arith.constant 0 : i32
    return %arg1, %c0_i32, %c0_i32_0 : i32, i32, i32
  }
  func.func @transform_5(%arg0: i32, %arg1: i32) -> (i32, i32, i32) {
    %c0_i32 = arith.constant 0 : i32
    %c0_i32_0 = arith.constant 0 : i32
    %c0_i32_1 = arith.constant 0 : i32
    return %arg1, %c0_i32, %c0_i32_0 : i32, i32, i32
  }
  func.func @transform_6(%arg0: i32, %arg1: i32) -> (i32, i32, i32) {
    %c0_i32 = arith.constant 0 : i32
    %c0_i32_0 = arith.constant 0 : i32
    %c0_i32_1 = arith.constant 0 : i32
    return %arg1, %c0_i32, %c0_i32_0 : i32, i32, i32
  }
  func.func @transform_7(%arg0: i32, %arg1: i32) -> (i32, i32, i32) {
    %c0_i32 = arith.constant 0 : i32
    %c0_i32_0 = arith.constant 0 : i32
    %c0_i32_1 = arith.constant 0 : i32
    return %arg1, %c0_i32, %c0_i32_0 : i32, i32, i32
  }
  func.func @transform_8(%arg0: i32, %arg1: i32) -> (i32, i32, i32) {
    %c0_i32 = arith.constant 0 : i32
    %c0_i32_0 = arith.constant 0 : i32
    %c0_i32_1 = arith.constant 0 : i32
    return %arg1, %c0_i32, %c0_i32_0 : i32, i32, i32
  }
  func.func @transform_9(%arg0: i32, %arg1: i32) -> (i32, i32, i32) {
    %c0_i32 = arith.constant 0 : i32
    %c0_i32_0 = arith.constant 0 : i32
    %c0_i32_1 = arith.constant 0 : i32
    return %arg1, %c0_i32, %c0_i32_0 : i32, i32, i32
  }
  func.func @transform_10(%arg0: i32, %arg1: i32) -> (i32, i32, i32) {
    %c0_i32 = arith.constant 0 : i32
    %c0_i32_0 = arith.constant 0 : i32
    %c0_i32_1 = arith.constant 0 : i32
    return %arg1, %c0_i32, %c0_i32_0 : i32, i32, i32
  }
  func.func @transform_11(%arg0: i32, %arg1: i32) -> (i32, i32, i32) {
    %c0_i32 = arith.constant 0 : i32
    %c0_i32_0 = arith.constant 0 : i32
    %c0_i32_1 = arith.constant 0 : i32
    return %arg1, %c0_i32, %c0_i32_0 : i32, i32, i32
  }
  func.func @transform_12(%arg0: i32, %arg1: i32) -> (i32, i32, i32) {
    %c0_i32 = arith.constant 0 : i32
    %c0_i32_0 = arith.constant 0 : i32
    %c0_i32_1 = arith.constant 0 : i32
    return %arg1, %c0_i32, %c0_i32_0 : i32, i32, i32
  }
  func.func @transform_13(%arg0: i32, %arg1: i32) -> (i32, i32, i32) {
    %c0_i32 = arith.constant 0 : i32
    %c0_i32_0 = arith.constant 0 : i32
    %c0_i32_1 = arith.constant 0 : i32
    return %arg1, %c0_i32, %c0_i32_0 : i32, i32, i32
  }
  func.func @transform_14(%arg0: i32, %arg1: i32) -> (i32, i32) {
    %c0_i32 = arith.constant 0 : i32
    %c0_i32_0 = arith.constant 0 : i32
    %c0_i32_1 = arith.constant 0 : i32
    return %c0_i32, %c0_i32_0 : i32, i32
  }
  func.func @transform_15(%arg0: i32, %arg1: i32) -> (i32, i32) {
    %c0_i32 = arith.constant 0 : i32
    %c0_i32_0 = arith.constant 0 : i32
    %c0_i32_1 = arith.constant 0 : i32
    return %c0_i32, %c0_i32_0 : i32, i32
  }
  func.func @transform_16(%arg0: i32, %arg1: i32) -> (i32, i32) {
    %c0_i32 = arith.constant 0 : i32
    %c0_i32_0 = arith.constant 0 : i32
    return %arg0, %c0_i32 : i32, i32
  }
}

</mosaic_0001>

<bundles_post_ra>
// kernel: tpu_custom_call.1
= control target key start
LH: loop header
LB: loop body
LE: loop exit
PB: predicated region body
PF: predicated region fallthrough
CT: control target
= control target key end

     0   :  { %s3535_s0 = inlined_call_operand.hbm [shape: f32[32,32], index: 0, kind: input, shape index: {}]   ;;  %s3536_s1 = inlined_call_operand.hbm [shape: f32[4,1,8], index: 1, kind: input, shape index: {}]   ;;  %s3537_s2 = inlined_call_operand.hbm [shape: f32[2,1,32], index: 2, kind: input, shape index: {}]   ;;  %s3538_s3 = inlined_call_operand.vmem [shape: f32[2,1,32], index: 3, kind: input, shape index: {}]   ;;  %s3539_s4 = inlined_call_operand.vmem [shape: f32[2,32,96], index: 4, kind: input, shape index: {}]   ;;  %s3540_s5 = inlined_call_operand.hbm [shape: f32[2,1,96], index: 5, kind: input, shape index: {}]   ;;  %s3541_s6 = inlined_call_operand.vmem [shape: f32[2,32,32], index: 6, kind: input, shape index: {}]   ;;  %s3542_s7 = inlined_call_operand.vmem [shape: f32[2,1,32], index: 7, kind: input, shape index: {}]   ;;  %s3543_s8 = inlined_call_operand.hbm [shape: f32[2,1,32], index: 8, kind: input, shape index: {}]   ;;  %s3544_s9 = inlined_call_operand.vmem [shape: f32[2,1,32], index: 9, kind: input, shape index: {}]   ;;  %s3545_s10 = inlined_call_operand.vmem [shape: f32[2,32,64], index: 10, kind: input, shape index: {}]   ;;  %s3546_s11 = inlined_call_operand.vmem [shape: f32[2,1,64], index: 11, kind: input, shape index: {}]   ;;  %s3547_s12 = inlined_call_operand.vmem [shape: f32[2,64,32], index: 12, kind: input, shape index: {}]   ;;  %s3548_s13 = inlined_call_operand.vmem [shape: f32[2,1,32], index: 13, kind: input, shape index: {}]   ;;  %s3549_s14 = inlined_call_operand.vmem [shape: f32[1,32], index: 14, kind: input, shape index: {}]   ;;  %s3550_s15 = inlined_call_operand.vmem [shape: f32[1,32], index: 15, kind: input, shape index: {}]   ;;  %s3551_s16 = inlined_call_operand.hbm [shape: f32[32,32], index: 16, kind: output, shape index: {}]  }
   0x1   :  { %3571 = sst [smem:[#allocation33_spill]] %s3535_s0 }
   0x2   :  { %3572 = sst [smem:[#allocation34_spill]] %s3536_s1 }
   0x3   :  { %3573 = sst [smem:[#allocation35_spill]] %s3537_s2 }
   0x4   :  { %3574 = sst [smem:[#allocation36_spill]] %s3538_s3 }
   0x5   :  { %3575 = sst [smem:[#allocation37_spill]] %s3539_s4 }
   0x6   :  { %3576 = sst [smem:[#allocation38_spill]] %s3540_s5 }
   0x7   :  { %3577 = sst [smem:[#allocation39_spill]] %s3541_s6 }
   0x8   :  { %3578 = sst [smem:[#allocation40_spill]] %s3542_s7 }
   0x9   :  { %3579 = sst [smem:[#allocation41_spill]] %s3543_s8 }
   0xa   :  { %3580 = sst [smem:[#allocation42_spill]] %s3544_s9 }
   0xb   :  { %3581 = sst [smem:[#allocation43_spill]] %s3545_s10 }
   0xc   :  { %3582 = sst [smem:[#allocation44_spill]] %s3546_s11 }
   0xd   :  { %3583 = sst [smem:[#allocation45_spill]] %s3547_s12 }
   0xe   :  { %3584 = sst [smem:[#allocation46_spill]] %s3548_s13 }
   0xf   :  { %3585 = sst [smem:[#allocation47_spill]] %s3549_s14 }
  0x10   :  { %3586 = sst [smem:[#allocation48_spill]] %s3550_s15 }
  0x11   :  { %3587 = sst [smem:[#allocation49_spill]] %s3551_s16 }
  0x12   :  { %21 = vsyncpa [#allocation4], 0 }
  0x13   :  { %23 = vsyncpa [#allocation4 + $0x1], 0 }
  0x14   :  { %24 = vsyncpa [#allocation7], 0 }
  0x15   :  { %26 = vsyncpa [#allocation7 + $0x1], 0 }
  0x16   :  { %27 = vsyncpa [#allocation10], 0 }
  0x17   :  { %29 = vsyncpa [#allocation10 + $0x1], 0 }
  0x18   :  { %30 = vsyncpa [#allocation5], 0 }
  0x19   :  { %32 = vsyncpa [#allocation5 + $0x1], 0  ;;  %s2916_s21 = smov 0   ;;  %s2918_s22 = smov 0  }
  0x1a   :  { %s2920_s23 = smov 0   ;;  %s2922_s24 = smov 0  }
  0x1b   :  { %s2924_s25 = smov 0   ;;  %s2926_s26 = smov 0  }
  0x1c   :  { %s2928_s27 = smov 0   ;;  %s2930_s28 = smov 0  }
  0x1d   :  { %s2932_s29 = smov 0   ;;  %s2934_s30 = smov 0  }
  0x1e   :  { %s2936_s0 = smov 0  }
  0x1f LB: > { %3588 = sst [smem:[#allocation18_spill]] %s2777_s23  ;;  %p3555_p0 = scmp.ne.s32.totalorder %s2789_s26, %s2785_s25  ;;  %s2809_s0 = sphi %s2936_s0, %s38_s0   ;;  %s2805_s30 = sphi %s2934_s30, %s3660_s30   ;;  %s2801_s29 = sphi %s2932_s29, %s3659_s29   ;;  %s2797_s28 = sphi %s2930_s28, %s3658_s28   ;;  %s2793_s27 = sphi %s2928_s27, %s3657_s27   ;;  %s2789_s26 = sphi %s2926_s26, %s3656_s26   ;;  %s2785_s25 = sphi %s2924_s25, %s3655_s25   ;;  %s2781_s24 = sphi %s2922_s24, %s3654_s24   ;;  %s2777_s23 = sphi %s2920_s23, %s3653_s23   ;;  %s2773_s22 = sphi %s2918_s22, %s3662_s22   ;;  %s2769_s21 = sphi %s2916_s21, %s3661_s21  }
  0x20   : > { %3589 = sst [smem:[#allocation19_spill]] %s2781_s24  ;;  %p65_p1 = scmp.eq.s32.totalorder %s2809_s0, 0 }
  0x21   : > { %3590 = sst [smem:[#allocation20_spill]] %s2785_s25  ;;  %p3553_p2 = scmp.lt.s32.totalorder %s2809_s0, 4 }
  0x22   : > { %3591 = sst [smem:[#allocation21_spill]] %s2789_s26  ;;  %p66_p3 = por %p65_p1, %p3555_p0 }
  0x23   : > { %3592 = sst [smem:[#allocation22_spill]] %s2793_s27  ;;  %s2983_s19 = sand.u32 1, %s2789_s26  }
  0x24   : > { %3593 = sst [smem:[#allocation23_spill]] %s2797_s28  ;;  %s2253_s16 = sshll.u32 %s2983_s19, 1 }
  0x25   : > { %3594 = sst [smem:[#allocation24_spill]] %s2801_s29  ;;  %p2989_p4 = pnand %p3553_p2, %p66_p3 }
  0x26   : > { %3595 = sst [smem:[#allocation25_spill]] %s2805_s30  ;;  %s2254_s18 = sshll.u32 %s2805_s30, 1 }
  0x27   : > { %3596 = sst [smem:[#allocation26_spill]] %s2809_s0  ;;  %s532_s13 = scalar_lea.vmem [#allocation6], %s2253_s16 }
  0x28   : > { %s3598_s1 = sld [smem:[#allocation34_spill]]  ;;  %s539_s20 = sshll.u32 %s532_s13, 4  ;;  %s540_s20 = int_to_ptr.vmem [resolvable:$true] %s539_s20 }
  0x29   : > { %s3599_s11 = sand.u32 1, %s2809_s0   ;;  %s2811_s9 = smov 16  }
  0x2a   : > { %s2999_s10 = scalar_lea.sflag [#allocation7], %s3599_s11  ;;  %s2812_s15 = smov 1  }
  0x2b   : > { %p2255_p5 = scmp.ge.s32.totalorder %s2809_s0, 1  ;;  %p660_p6 = scmp.lt.s32.totalorder %s2809_s0, 5 }
  0x2c   : > { %s3011_s11 = sadd.s32 4294967295, %s2809_s0   ;;  %s47_s16 = sadd.s32 1, %s2801_s29 }
  0x2d   : > { %p3006_p7 = pnand %p2255_p5, %p660_p6  ;;  %p48_p8 = scmp.ge.s32.totalorder %s47_s16, 2 }
  0x2e   : > { %s536_s14 = scalar_lea.hbm %s3598_s1, %s2254_s18  ;;  %p3554_p9 = scmp.ne.s32.totalorder %s2785_s25, %s2781_s24 }
  0x2f   : > { %s537_s12 = sshll.u32 %s536_s14, 4  ;;  %s2247_s14 = sadd.s32 4294967294, %s2809_s0   ;;  %s538_s12 = int_to_ptr.hbm [resolvable:$true] %s537_s12 }
  0x30   : > { %2331 = dma.hbm_to_vmem [thread:$0]  (!%p2989_p4), %s538_s12, 32, %s540_s20, %s2999_s10, %s2811_s9, %s2811_s9, %s2812_s15  }
  0x31   : > { %p71_p10 = scmp.eq.s32.totalorder %s3011_s11, 0  ;;  %s109_s9 = sadd.s32 1, %s2777_s23 }
  0x32   : > { %s3664_s16 = smov (%p48_p8, %s47_s16), 0  ;;  %s3602_s12 = sadd.s32 1, %s2805_s30 }
  0x33   : > { %3601 = sst [smem:[#allocation27_spill]] %s3664_s16  ;;  %s3666_s12 = smov (!%p48_p8, %s3602_s12), %s2805_s30 }
  0x34   : > { %p3029_p11 = por %p71_p10, %p3554_p9  ;;  %s106_s18 = ssub.s32 %s2801_s29, %s3664_s16 }
  0x35   : > { %p52_p12 = scmp.ge.s32.totalorder %s3666_s12, 2  ;;  %p107_p13 = scmp.eq.s32.totalorder %s106_s18, 0 }
  0x36   : > { %p116_p3 = scmp.ne.s32.totalorder %s2777_s23, %s2773_s22  ;;  %p122_p5 = scmp.ne.s32.totalorder %s2773_s22, %s2769_s21 }
  0x37   : > { %s3668_s12 = smov (%p52_p12, %s3666_s12), 0  ;;  %p474_p9 = scmp.eq.s32.totalorder %s3011_s11, 3 }
  0x38   : > { %3604 = sst [smem:[#allocation28_spill]] %s3668_s12  ;;  %s54_s15 = ssub.s32 %s2805_s30, %s3668_s12 }
  0x39   : > { %s3042_s20 = scalar_select %p107_p13, %s2777_s23, %s109_s9  }
  0x3a   : > { %p118_p6 = por %p116_p3, %p65_p1  ;;  %p55_p8 = scmp.eq.s32.totalorder %s54_s15, 0 }
  0x3b   : > { %3605 = sst [smem:[#allocation29_spill]] %s3042_s20  ;;  %p3050_p2 = por %p122_p5, %p71_p10 }
  0x3c   : > { %p480_p0 = scmp.eq.s32.totalorder %s2247_s14, 3  ;;  %s3607_s21 = sadd.s32 1, %s2789_s26 }
  0x3d   : > { %s3058_s18 = scalar_select %p55_p8, %s2789_s26, %s3607_s21  }
  0x3e   : > { %p3609_p12 = scmp.ne.s32.totalorder %s2789_s26, %s2785_s25  ;;  %p3612_p1 = scmp.ne.s32.totalorder %s2785_s25, %s2781_s24 }
  0x3f   : > { %3608 = sst [smem:[#allocation30_spill]] %s3058_s18  ;;  %s3075_s12 = sand.u32 1, %s2777_s23  }
  0x40   : > { %p3063_p13 = por %p474_p9, %p3609_p12  ;;  %p3070_p3 = por %p480_p0, %p3612_p1 }
  0x41   : > { %p3615_p10 = scmp.lt.s32.totalorder %s2809_s0, 4  ;;  %s3617_s5 = sld [smem:[#allocation38_spill]] }
  0x42   : > { %s3610_s9 = scalar_select %p3063_p13, 1, 0 }
  0x43   : > { %s3613_s15 = scalar_select %p3070_p3, 1, 0 }
  0x44   : > { %3611 = sst [smem:[#allocation31_spill]] %s3610_s9  ;;  %p3079_p5 = pnand %p3615_p10, %p118_p6 }
  0x45   : > { %3614 = sst [smem:[#allocation32_spill]] %s3613_s15  ;;  %s583_s20 = scalar_lea.vmem [#allocation9], %s3075_s12 }
  0x46   : > { %s590_s24 = sshll.u32 %s583_s20, 4  ;;  %s3618_s23 = sand.u32 1, %s2809_s0   ;;  %s591_s24 = int_to_ptr.vmem [resolvable:$true] %s590_s24 }
  0x47   : > { %s586_s18 = scalar_lea.hbm %s3617_s5, %s2801_s29  ;;  %s581_s15 = scalar_lea.sflag [#allocation10], %s3618_s23 }
  0x48   : > { %s588_s26 = sshll.u32 %s586_s18, 4  ;;  %s2250_s9 = sshll.u32 %s2983_s19, 4  ;;  %s589_s26 = int_to_ptr.hbm [resolvable:$true] %s588_s26 }
  0x49   : > { %2337 = dma.hbm_to_vmem [thread:$0]  (!%p3079_p5), %s589_s26, 16, %s591_s24, %s581_s15  }
  0x4a   : > { %s2307_s7 = sshll.u32 %s2805_s30, 4  ;;  %s3619_s14 = sld [smem:[#allocation33_spill]] }
  0x4b   : > { %s510_s18 = scalar_lea.vmem [#allocation3], %s2250_s9  ;;  %s507_s0 = scalar_lea.sflag [#allocation4], %s2983_s19 }
  0x4c   : > { %s518_s20 = sshll.u32 %s510_s18, 4  ;;  %s2813_s3 = smov 128   ;;  %s519_s20 = int_to_ptr.vmem [resolvable:$true] %s518_s20 }
  0x4d   : > { %s2814_s23 = smov 8   ;;  %s3620_s2 = sld [smem:[#allocation35_spill]] }
  0x4e   : > { %s552_s6 = scalar_lea.vmem [#allocation8], %s3075_s12  ;;  %s3621_s8 = sld [smem:[#allocation41_spill]] }
  0x4f   : > { %s614_s18 = scalar_lea.vmem [#allocation11], %s3075_s12 }
  0x50   : > { %s515_s21 = scalar_lea.hbm %s3619_s14, %s2307_s7  ;;  %s559_s7 = sshll.u32 %s552_s6, 4  ;;  %s560_s7 = int_to_ptr.vmem [resolvable:$true] %s559_s7 }
  0x51   : > { %s516_s5 = sshll.u32 %s515_s21, 4  ;;  %s621_s30 = sshll.u32 %s614_s18, 4  ;;  %s517_s5 = int_to_ptr.hbm [resolvable:$true] %s516_s5  ;;  %s622_s30 = int_to_ptr.vmem [resolvable:$true] %s621_s30 }
  0x52   : > { %2328 = dma.hbm_to_vmem [thread:$0]  (!%p2989_p4), %s517_s5, 256, %s519_s20, %s507_s0, %s2813_s3, %s2813_s3, %s2814_s23  }
  0x53   : > { %s555_s4 = scalar_lea.hbm %s3620_s2, %s2801_s29  ;;  %664 = sbr.rel (%p3006_p7) target bundleno = 3130 (0xc3a), region = 84 }
  0x54   : > { %s557_s14 = sshll.u32 %s555_s4, 4  ;;  %s617_s19 = scalar_lea.hbm %s3621_s8, %s2801_s29  ;;  %s558_s14 = int_to_ptr.hbm [resolvable:$true] %s557_s14 }
  0x55   : > { %2334 = dma.hbm_to_vmem [thread:$0]  (!%p3079_p5), %s558_s14, 16, %s560_s7, %s2999_s10  }
  0x56   : > { %s619_s27 = sshll.u32 %s617_s19, 4  ;;  %s3118_s3 = sand.u32 (!%p3006_p7), 1, %s2785_s25   ;;  %s620_s27 = int_to_ptr.hbm [resolvable:$true] %s619_s27 }
  0x57   : > { %2340 = dma.hbm_to_vmem [thread:$0]  (!%p3079_p5), %s620_s27, 16, %s622_s30, %s581_s15  }
  0x58   : > { %s3568_s5 = sshll.u32 %s3118_s3, 4  ;;  %s667_s10 = scalar_lea.sflag [#allocation4], %s3118_s3 }
  0x59   : > { %s3124_s28 = scalar_lea.vmem [#allocation3], %s3568_s5 }
  0x5a   : > { %2748 = dma.done.wait (%p3029_p11), %s667_s10, 256  }
  0x5b   : > { %2750 = vsyncadd (%p3029_p11), %s667_s10, 4294967040  ;;  %s676_s27 = sand.u32 1, %s3011_s11   ;;  %s2257_s30 = sshll.u32 %s3118_s3, 1 }
  0x5c   : > { %s677_s0 = scalar_lea.sflag [#allocation7], %s676_s27  ;;  %s3132_s13 = scalar_lea.vmem [#allocation6], %s2257_s30 }
  0x5d   : > { %2752 = dma.done.wait (%p3029_p11), %s677_s0, 32  }
  0x5e   : > { %2754 = vsyncadd (%p3029_p11), %s677_s0, 4294967264  ;;  %s3139_s16 = sand.u32 1, %s2773_s22  }
  0x5f   : > { %2756 = dma.done.wait (%p3050_p2), %s677_s0, 16  }
  0x60   : > { %2758 = vsyncadd (%p3050_p2), %s677_s0, 4294967280  ;;  %s696_s11 = scalar_lea.sflag [#allocation10], %s676_s27 }
  0x61   : > { %2760 = dma.done.wait (%p3050_p2), %s696_s11, 32  }
  0x62   : > { %2762 = vsyncadd (%p3050_p2), %s696_s11, 4294967264  ;;  %s3622_s17 = sld [smem:[#allocation22_spill]]  ;;  %s3632_s23 = sshll.u32 %s3118_s3, 4 }
  0x63   : > { %s3624_s14 = sld [smem:[#allocation37_spill]]  ;;  %s3200_s24 = scalar_lea.vmem [#allocation12], %s3632_s23 }
  0x64   : > { %s3625_s18 = sld [smem:[#allocation39_spill]] }
  0x65   : > { %s3627_s15 = sld [smem:[#allocation42_spill]] }
  0x66   : > { %s3628_s5 = sld [smem:[#allocation43_spill]] }
  0x67   : > { %s3630_s29 = sld [smem:[#allocation46_spill]] }
  0x68   : > { %p811_p0 = scmp.lt.s32.totalorder %s3622_s17, 1  ;;  %s3631_s0 = sld [smem:[#allocation45_spill]] }
  0x69   : > { %p2267_p2 = scmp.ne.s32.totalorder %s3622_s17, 0 }
  0x6a   : > { %s3153_s20 = scalar_select %p811_p0, %s3622_s17, 1 }
  0x6c   : > { %s2308_s1 = sshll.u32 %s3153_s20, 5  ;;  %s829_s12 = scalar_lea.vmem %s3627_s15, %s3153_s20 }
  0x6d   : > { %s3163_s9 = scalar_lea.vmem %s3624_s14, %s2308_s1  ;;  %s3168_s10 = scalar_lea.vmem %s3625_s18, %s2308_s1 }
  0x6e   : > { %s3181_s2 = scalar_lea.vmem %s3628_s5, %s2308_s1  ;;  %s3629_s14 = sld [smem:[#allocation44_spill]] }
  0x6f   : > { %s2311_s21 = sshll.u32 %s3153_s20, 6  ;;  %s845_s25 = scalar_lea.vmem %s3630_s29, %s3153_s20 }
  0x70   : > { %s3195_s11 = scalar_lea.vmem %s3631_s0, %s2311_s21  ;;  %s707_s15 = scalar_lea.vmem [#allocation11], %s3139_s16 }
  0x71   : > { %850 = sbr.rel (%p2267_p2) target bundleno = 121 (0x79), region = 108 }
  0x74   : > { %s837_s8 = scalar_lea.vmem %s3629_s14, %s3153_s20 }
  0x76   : > { %v851_v0 = vld [vmem:[%s3124_s28] sm:$0xff]  ;;  %vm853_vm0 = vcmask 261120   ;;  %v852_v1 = vld [vmem:[%s3124_s28 + $0x8] sm:$0xff] }
  0x77   : > { %854 = vst.msk [vmem:[#allocation2] sm:$0xff] %vm853_vm0, %v851_v0 }
  0x78   : > { %855 = vst.msk [vmem:[#allocation2 + $0x8] sm:$0xff] %vm853_vm0, %v852_v1 }
  0x79 PF: > { %vm860_vm1 = vcmask 261120   ;;  %v2815_v4 = vmov 32.0   ;;  %v957_v16 = vld [vmem:[%s3163_s9 + $0x18] sm:$0xff]  ;;  %v956_v17 = vld [vmem:[%s3163_s9 + $0x10] sm:$0xff]  ;;  %v955_v18 = vld [vmem:[%s3163_s9 + $0x8] sm:$0xff]  ;;  %s3633_s29 = scalar_lea.vmem [#allocation8], %s3139_s16 }
  0x7a   : > { %2465 = vrcp.f32 %v2815_v4  ;;  %980 = vmatpush.msra.mxu0 %v957_v16  ;;  %v954_v19 = vld [vmem:[%s3163_s9] sm:$0xff]  ;;  %s3634_s17 = sld [smem:[#allocation36_spill]]  ;;  %s3636_s1 = scalar_lea.vmem [#allocation9], %s3139_s16  ;;  %vm995_vm9 = vcmask 64512   ;;  %v3259_v58 = vld [vmem:[%s3132_s13] ss:$0 sm:$0xff] }
  0x7b   : > { %v3224_v39 = vld [vmem:[%s3633_s29] ss:$0 sm:$0xff]  ;;  %s2816_s9 = smov 120   ;;  %s2817_s26 = smov 88  }
  0x7c   : > { %981 = vmatpush.msra.mxu0 %v956_v17  ;;  %v3238_v50 = vld [vmem:[%s3636_s1] ss:$0 sm:$0xff]  ;;  %s2818_s6 = smov 96   ;;  %s2819_s7 = smov 112  }
  0x7d   : > { %s2820_s14 = smov 64   ;;  %s2821_s21 = smov 80  }
  0x7e   : > { %v3205_v2 = vld [vmem:[#allocation2] sm:$0xff]  ;;  %982 = vmatpush.msra.mxu0 %v955_v18  ;;  %s2822_s19 = smov 56   ;;  %s2823_s18 = smov 104  }
  0x7f   : > { %v861_v3 = vsel %vm860_vm1, %v3205_v2, 0.0  ;;  %v3218_v26 = vld [vmem:[#allocation2 + $0x8] sm:$0xff]  ;;  %s2824_s27 = smov 72   ;;  %s2825_s30 = smov 48  }
  0x80   : > { %862 = vadd.xlane.f32.xlu0 %v861_v3  ;;  %v2466_v5 = vpop.eup %2465  ;;  %983 = vmatpush.msra.mxu0 %v954_v19  ;;  %v864_v28 = vsel %vm860_vm1, %v3218_v26, 0.0  ;;  %s3635_s4 = scalar_lea.vmem %s3634_s17, %s3153_s20  ;;  %s2827_s0 = smov 8  }
  0x81   : > { %v868_v6 = vmul.f32 32.0, %v2466_v5  ;;  %vm872_vm2 = vweird.f32 %v2466_v5  ;;  %v3232_v46 = vld [vmem:[%s3635_s4] ss:$0 sm:$0xff]  ;;  %s2828_s23 = smov 16   ;;  %s2829_s29 = smov 24  }
  0x82   : > { %s3637_s28 = sld [smem:[#allocation40_spill]] }
  0x83   : > { %v869_v7 = vsub.f32 1.0, %v868_v6 }
  0x85   : > { %v870_v8 = vmul.f32 %v2466_v5, %v869_v7 }
  0x87   : > { %v871_v9 = vadd.f32 %v2466_v5, %v870_v8 }
  0x88   : > { %s3638_s17 = scalar_lea.vmem %s3637_s28, %s3153_s20 }
  0x89   : > { %v3209_v10 = vsel %vm872_vm2, %v2466_v5, %v871_v9 }
  0xf3   : > { %v863_v11 = vpop.xlane.xlu0 %862 }
  0xf4   : > { %v874_v12 = vmul.f32 %v3209_v10, %v863_v11 }
  0xf6   : > { %v876_v13 = vsub.f32 %v3205_v2, %v874_v12 }
  0xf8   : > { %v878_v14 = vmul.f32 %v876_v13, %v876_v13  ;;  %v915_v44 = vmul.f32 %v3224_v39, %v876_v13 }
  0xfa   : > { %v880_v15 = vsel %vm860_vm1, %v878_v14, 0.0 }
  0xfb   : > { %881 = vadd.xlane.f32.xlu0 %v880_v15 }
 0x103   : > { %865 = vadd.xlane.f32.xlu0 %v864_v28 }
 0x16e   : > { %v882_v20 = vpop.xlane.xlu0 %881 }
 0x16f   : > { %v886_v21 = vmul.f32 0.032258064, %v882_v20 }
 0x171   : > { %2467 = vrsqrt.f32 %v886_v21  ;;  %vm895_vm3 = vcmp.eq.f32.partialorder %v886_v21, inf  ;;  %v898_v31 = vand.u32 2147483648, %v886_v21  ;;  %vm897_vm4 = vcmp.eq.f32.partialorder %v886_v21, 0.0 }
 0x176   : > { %v866_v54 = vpop.xlane.xlu0 %865 }
 0x177   : > { %v2468_v22 = vpop.eup %2467  ;;  %v875_v15 = vmul.f32 %v3209_v10, %v866_v54 }
 0x178   : > { %v889_v23 = vmul.f32 %v2468_v22, %v886_v21 }
 0x179   : > { %v3275_v16 = vsub.f32 %v3218_v26, %v875_v15 }
 0x17a   : > { %v890_v24 = vmul.f32 %v2468_v22, %v889_v23 }
 0x17b   : > { %v879_v17 = vmul.f32 %v3275_v16, %v3275_v16 }
 0x17c   : > { %v891_v25 = vmul.f32 0.5, %v890_v24 }
 0x17d   : > { %v883_v18 = vsel %vm860_vm1, %v879_v17, 0.0 }
 0x17e   : > { %v892_v27 = vsub.f32 1.5, %v891_v25 }
 0x180   : > { %v893_v29 = vmul.f32 %v2468_v22, %v892_v27 }
 0x182   : > { %v894_v30 = vmul.f32 %v893_v29, %v886_v21 }
 0x184   : > { %v896_v32 = vsel %vm895_vm3, %v886_v21, %v894_v30 }
 0x185   : > { %v899_v33 = vsel %vm897_vm4, %v898_v31, %v896_v32 }
 0x186   : > { %v917_v34 = vadd.f32 1e-06, %v899_v33 }
 0x188   : > { %2469 = vrcp.f32 %v917_v34  ;;  %v930_v38 = vand.u32 2147483648, %v917_v34  ;;  %v928_v41 = vand.u32 2147483647, %v917_v34  ;;  %vm924_vm6 = vweird.f32 %v917_v34 }
 0x18a   : > { %v931_v43 = vor.u32 1.1754944e-38, %v930_v38  ;;  %vm929_vm8 = vcmp.eq.f32.partialorder %v928_v41, 8.507059e+37 }
 0x18e   : > { %v2470_v35 = vpop.eup %2469 }
 0x18f   : > { %v920_v36 = vmul.f32 %v2470_v35, %v917_v34  ;;  %vm925_vm5 = vweird.f32 %v2470_v35 }
 0x190   : > { %vm926_vm7 = vmor %vm924_vm6, %vm925_vm5 }
 0x191   : > { %v921_v37 = vsub.f32 1.0, %v920_v36 }
 0x193   : > { %v922_v40 = vmul.f32 %v2470_v35, %v921_v37 }
 0x195   : > { %v923_v42 = vadd.f32 %v2470_v35, %v922_v40 }
 0x197   : > { %v927_v45 = vsel %vm926_vm7, %v2470_v35, %v923_v42 }
 0x198   : > { %v932_v47 = vsel %vm929_vm8, %v931_v43, %v927_v45 }
 0x199   : > { %v933_v48 = vmul.f32 %v932_v47, %v915_v44 }
 0x19b   : > { %v952_v49 = vadd.f32 %v3232_v46, %v933_v48 }
 0x19d   : > { %2268 = vmatmul.msk.f32.vlgmr.msra.gmra.mxu0 %vm860_vm1, %v952_v49 }
 0x21a   : > { %v985_v51 = vpop.f32.mrf.mxu0 }
 0x21b   : > { %v3241_v52 = vadd.f32 %v3238_v50, %v985_v51 }
 0x21d   : > { %1075 = vrot.lane.b32.xlu0 %v3241_v52, %s2816_s9  ;;  %1077 = vrot.lane.b32.xlu2 %v3241_v52, %s2817_s26 }
 0x21e   : > { %993 = vrot.lane.b32.xlu1 %v3241_v52, %s2818_s6 }
 0x225   : > { %1155 = vrot.lane.b32.xlu0 %v3241_v52, %s2819_s7  ;;  %1049 = vrot.lane.b32.xlu2 %v3241_v52, %s2820_s14 }
 0x277   : > { %v1078_v53 = vpop.permute.xlu2 %1077 }
 0x278   : > { %2273 = vmatpush.xpose.msk.msra.mxu3 %vm995_vm9, %v1078_v53 }
 0x27f   : > { %v1050_v57 = vpop.permute.xlu2 %1049 }
 0x28f   : > { %v1076_v55 = vpop.permute.xlu0 %1075 }
 0x290   : > { %v994_v56 = vpop.permute.xlu1 %993  ;;  %2274 = vmatmul.msk.f32.vlgmr.msra.gmra.mxu3 %vm995_vm9, %v1076_v55 }
 0x291   : > { %2270 = vmatpush.xpose.msk.msra.mxu1 %vm995_vm9, %v994_v56 }
 0x294   : > { %2271 = vmatmul.msk.f32.vlgmr.msra.gmra.mxu1 %vm995_vm9, %v3241_v52 }
 0x295   : > { %1070 = vmatpush.msrb.mxu1 %v1050_v57 }
 0x297   : > { %v1156_v43 = vpop.permute.xlu0 %1155 }
 0x311   : > { %v1017_v59 = vpop.f32.mrf.mxu1 }
 0x312   : > { %v1020_v60 = vmul.f32 0.35355338, %v1017_v59 }
 0x313   : > { %v1100_v61 = vpop.f32.mrf.mxu3 }
 0x314   : > { %v1024_v62 = vadd.f32 %v3259_v58, %v1020_v60  ;;  %v1103_v63 = vmul.f32 0.35355338, %v1100_v61 }
 0x316   : > { %v1025_v0 = vsel %vm995_vm9, %v1024_v62, -inf  ;;  %v1104_v1 = vadd.f32 %v3259_v58, %v1103_v63 }
 0x317   : > { %1026 = vmax.xlane.f32.xlu1 %v1025_v0 }
 0x318   : > { %v1105_v3 = vsel %vm995_vm9, %v1104_v1, -inf }
 0x31f   : > { %1106 = vmax.xlane.f32.xlu1 %v1105_v3 }
 0x38a   : > { %v1027_v4 = vpop.xlane.xlu1 %1026 }
 0x38b   : > { %v1028_v5 = vsub.f32 %v1024_v62, %v1027_v4 }
 0x38d   : > { %v1029_v6 = vmul.f32 1.442695, %v1028_v5 }
 0x38f   : > { %2471 = vpow2.f32 %v1029_v6 }
 0x392   : > { %v1107_v7 = vpop.xlane.xlu1 %1106 }
 0x393   : > { %v1108_v8 = vsub.f32 %v1104_v1, %v1107_v7 }
 0x395   : > { %v2472_v9 = vpop.eup %2471  ;;  %v1109_v11 = vmul.f32 1.442695, %v1108_v8 }
 0x396   : > { %v1031_v12 = vsel %vm995_vm9, %v2472_v9, 0.0 }
 0x397   : > { %2473 = vpow2.f32 %v1109_v11  ;;  %1032 = vadd.xlane.f32.xlu2 %v1031_v12 }
 0x39d   : > { %v2474_v13 = vpop.eup %2473 }
 0x39e   : > { %v1111_v14 = vsel %vm995_vm9, %v2474_v13, 0.0 }
 0x39f   : > { %1112 = vadd.xlane.f32.xlu1 %v1111_v14 }
 0x3af   : > { %1157 = vrot.lane.b32.xlu2 %v3241_v52, %s2821_s21 }
 0x3b8   : > { %1129 = vrot.lane.b32.xlu1 %v3241_v52, %s2822_s19 }
 0x3c0   : > { %1235 = vrot.lane.b32.xlu1 %v3241_v52, %s2823_s18 }
 0x3d8   : > { %884 = vadd.xlane.f32.xlu2 %v883_v18 }
 0x3f0   : > { %1237 = vrot.lane.b32.xlu2 %v3241_v52, %s2824_s27 }
 0x40a   : > { %v1033_v19 = vpop.xlane.xlu2 %1032 }
 0x40b   : > { %2475 = vrcp.f32 %v1033_v19  ;;  %v1045_v25 = vand.u32 2147483648, %v1033_v19  ;;  %v1043_v28 = vand.u32 2147483647, %v1033_v19  ;;  %vm1039_vm11 = vweird.f32 %v1033_v19 }
 0x40d   : > { %v1046_v31 = vor.u32 1.1754944e-38, %v1045_v25  ;;  %vm1044_vm13 = vcmp.eq.f32.partialorder %v1043_v28, 8.507059e+37 }
 0x411   : > { %v2476_v20 = vpop.eup %2475 }
 0x412   : > { %v1035_v21 = vmul.f32 %v2476_v20, %v1033_v19  ;;  %v1158_v22 = vpop.permute.xlu2 %1157  ;;  %v1113_v23 = vpop.xlane.xlu1 %1112  ;;  %vm1040_vm10 = vweird.f32 %v2476_v20 }
 0x413   : > { %2477 = vrcp.f32 %v1113_v23  ;;  %2276 = vmatpush.xpose.msk.msra.mxu1 %vm995_vm9, %v1158_v22  ;;  %vm1041_vm12 = vmor %vm1039_vm11, %vm1040_vm10  ;;  %v1125_v40 = vand.u32 2147483648, %v1113_v23  ;;  %vm1119_vm15 = vweird.f32 %v1113_v23  ;;  %v1123_v41 = vand.u32 2147483647, %v1113_v23 }
 0x414   : > { %v1036_v24 = vsub.f32 1.0, %v1035_v21 }
 0x415   : > { %v1126_v44 = vor.u32 1.1754944e-38, %v1125_v40  ;;  %vm1124_vm2 = vcmp.eq.f32.partialorder %v1123_v41, 8.507059e+37 }
 0x416   : > { %v1037_v27 = vmul.f32 %v2476_v20, %v1036_v24 }
 0x418   : > { %v1038_v29 = vadd.f32 %v2476_v20, %v1037_v27 }
 0x419   : > { %v2478_v30 = vpop.eup %2477 }
 0x41a   : > { %v1115_v32 = vmul.f32 %v2478_v30, %v1113_v23  ;;  %v1042_v33 = vsel %vm1041_vm12, %v2476_v20, %v1038_v29  ;;  %vm1120_vm14 = vweird.f32 %v2478_v30 }
 0x41b   : > { %v1047_v34 = vsel %vm1044_vm13, %v1046_v31, %v1042_v33  ;;  %vm1121_vm0 = vmor %vm1119_vm15, %vm1120_vm14 }
 0x41c   : > { %v1116_v35 = vsub.f32 1.0, %v1115_v32  ;;  %v1048_v36 = vmul.f32 %v2472_v9, %v1047_v34 }
 0x41e   : > { %v1117_v37 = vmul.f32 %v2478_v30, %v1116_v35  ;;  %2272 = vmatmul.msk.f32.vlgmr.msrb.gmra.mxu1 %vm995_vm9, %v1048_v36 }
 0x420   : > { %v1118_v38 = vadd.f32 %v2478_v30, %v1117_v37 }
 0x422   : > { %v1122_v42 = vsel %vm1121_vm0, %v2478_v30, %v1118_v38 }
 0x423   : > { %v1127_v45 = vsel %vm1124_vm2, %v1126_v44, %v1122_v42 }
 0x424   : > { %v1128_v48 = vmul.f32 %v2474_v13, %v1127_v45  ;;  %v916_v13 = vmul.f32 %v3224_v39, %v3275_v16 }
 0x426   : > { %2277 = vmatmul.msk.f32.vlgmr.msra.gmra.mxu1 %vm995_vm9, %v1156_v43 }
 0x42a   : > { %v1130_v47 = vpop.permute.xlu1 %1129 }
 0x42b   : > { %1150 = vmatpush.msra.mxu2 %v1130_v47 }
 0x42c   : > { %2275 = vmatmul.msk.f32.vlgmr.msra.gmra.mxu2 %vm995_vm9, %v1128_v48 }
 0x432   : > { %v1236_v56 = vpop.permute.xlu1 %1235 }
 0x44b   : > { %v885_v49 = vpop.xlane.xlu2 %884 }
 0x44c   : > { %v887_v51 = vmul.f32 0.032258064, %v885_v49 }
 0x44e   : > { %2479 = vrsqrt.f32 %v887_v51  ;;  %vm907_vm3 = vcmp.eq.f32.partialorder %v887_v51, inf  ;;  %v910_v63 = vand.u32 2147483648, %v887_v51  ;;  %vm909_vm4 = vcmp.eq.f32.partialorder %v887_v51, 0.0 }
 0x453   : > { %v1238_v53 = vpop.permute.xlu2 %1237 }
 0x454   : > { %v2480_v54 = vpop.eup %2479  ;;  %2279 = vmatpush.xpose.msk.msrb.mxu2 %vm995_vm9, %v1238_v53 }
 0x455   : > { %v901_v55 = vmul.f32 %v2480_v54, %v887_v51 }
 0x457   : > { %v902_v57 = vmul.f32 %v2480_v54, %v901_v55  ;;  %2280 = vmatmul.msk.f32.vlgmr.msrb.gmra.mxu2 %vm995_vm9, %v1236_v56 }
 0x459   : > { %v903_v59 = vmul.f32 0.5, %v902_v57 }
 0x45b   : > { %v904_v60 = vsub.f32 1.5, %v903_v59  ;;  %v2459_v59 = vld [vmem:[%s3132_s13 + $0x1] ss:$0 sm:$0xff]  ;;  %s2826_s13 = smov 40  }
 0x45d   : > { %v905_v61 = vmul.f32 %v2480_v54, %v904_v60 }
 0x45f   : > { %v906_v62 = vmul.f32 %v905_v61, %v887_v51 }
 0x461   : > { %v908_v0 = vsel %vm907_vm3, %v887_v51, %v906_v62 }
 0x462   : > { %v911_v1 = vsel %vm909_vm4, %v910_v63, %v908_v0 }
 0x463   : > { %v918_v3 = vadd.f32 1e-06, %v911_v1 }
 0x465   : > { %2481 = vrcp.f32 %v918_v3  ;;  %v945_v7 = vand.u32 2147483648, %v918_v3  ;;  %v943_v9 = vand.u32 2147483647, %v918_v3  ;;  %vm939_vm6 = vweird.f32 %v918_v3 }
 0x467   : > { %v946_v12 = vor.u32 1.1754944e-38, %v945_v7  ;;  %vm944_vm8 = vcmp.eq.f32.partialorder %v943_v9, 8.507059e+37 }
 0x46b   : > { %v2482_v4 = vpop.eup %2481 }
 0x46c   : > { %v935_v5 = vmul.f32 %v2482_v4, %v918_v3  ;;  %vm940_vm5 = vweird.f32 %v2482_v4 }
 0x46d   : > { %vm941_vm7 = vmor %vm939_vm6, %vm940_vm5 }
 0x46e   : > { %v936_v6 = vsub.f32 1.0, %v935_v5 }
 0x470   : > { %v937_v8 = vmul.f32 %v2482_v4, %v936_v6 }
 0x472   : > { %v938_v11 = vadd.f32 %v2482_v4, %v937_v8 }
 0x474   : > { %v942_v14 = vsel %vm941_vm7, %v2482_v4, %v938_v11 }
 0x475   : > { %v947_v15 = vsel %vm944_vm8, %v946_v12, %v942_v14 }
 0x476   : > { %v948_v17 = vmul.f32 %v947_v15, %v916_v13 }
 0x478   : > { %v953_v18 = vadd.f32 %v3232_v46, %v948_v17 }
 0x47a   : > { %2269 = vmatmul.msk.f32.gmra.mxu0 %vm860_vm1, %v953_v18 }
 0x49b   : > { %v3292_v19 = vpop.f32.mrf.mxu1 }
 0x4a3   : > { %v1180_v20 = vpop.f32.mrf.mxu1 }
 0x4a4   : > { %v1183_v21 = vmul.f32 0.35355338, %v1180_v20 }
 0x4a6   : > { %v1184_v22 = vadd.f32 %v3259_v58, %v1183_v21 }
 0x4a8   : > { %v1185_v23 = vsel %vm995_vm9, %v1184_v22, -inf }
 0x4a9   : > { %1186 = vmax.xlane.f32.xlu0 %v1185_v23 }
 0x4af   : > { %v3313_v46 = vpop.f32.mrf.mxu2 }
 0x4bd   : > { %1209 = vrot.lane.b32.xlu0 %v3241_v52, %s2825_s30 }
 0x4da   : > { %v1260_v25 = vpop.f32.mrf.mxu2 }
 0x4db   : > { %v1263_v28 = vmul.f32 0.35355338, %v1260_v25 }
 0x4dd   : > { %v1264_v29 = vadd.f32 %v3259_v58, %v1263_v28 }
 0x4df   : > { %v1265_v31 = vsel %vm995_vm9, %v1264_v29, -inf }
 0x4f7   : > { %v988_v39 = vpop.f32.mrf.mxu0 }
 0x4f8   : > { %v3299_v16 = vadd.f32 %v3238_v50, %v988_v39 }
 0x4fa   : > { %1418 = vrot.lane.b32.xlu2 %v3299_v16, %s2817_s26  ;;  %1335 = vrot.lane.b32.xlu1 %v3299_v16, %s2818_s6 }
 0x4fb   : > { %1416 = vrot.lane.b32.xlu0 %v3299_v16, %s2816_s9 }
 0x502   : > { %1578 = vrot.lane.b32.xlu2 %v3299_v16, %s2824_s27  ;;  %1498 = vrot.lane.b32.xlu1 %v3299_v16, %s2821_s21 }
 0x503   : > { %1496 = vrot.lane.b32.xlu0 %v3299_v16, %s2819_s7 }
 0x51c   : > { %v1187_v50 = vpop.xlane.xlu0 %1186 }
 0x51d   : > { %v1188_v24 = vsub.f32 %v1184_v22, %v1187_v50 }
 0x51f   : > { %v1189_v27 = vmul.f32 1.442695, %v1188_v24 }
 0x521   : > { %2483 = vpow2.f32 %v1189_v27 }
 0x527   : > { %v2484_v30 = vpop.eup %2483 }
 0x528   : > { %v1191_v32 = vsel %vm995_vm9, %v2484_v30, 0.0 }
 0x52b   : > { %1266 = vmax.xlane.f32.xlu2 %v1265_v31 }
 0x52c   : > { %1192 = vadd.xlane.f32.xlu1 %v1191_v32 }
 0x52f   : > { %v1210_v33 = vpop.permute.xlu0 %1209 }
 0x530   : > { %1230 = vmatpush.msrb.mxu3 %v1210_v33 }
 0x545   : > { %1576 = vrot.lane.b32.xlu1 %v3299_v16, %s2823_s18 }
 0x554   : > { %v1419_v34 = vpop.permute.xlu2 %1418 }
 0x555   : > { %2286 = vmatpush.xpose.msk.msra.mxu2 %vm995_vm9, %v1419_v34 }
 0x55c   : > { %v1579_v35 = vpop.permute.xlu2 %1578 }
 0x55d   : > { %2292 = vmatpush.xpose.msk.msrb.mxu2 %vm995_vm9, %v1579_v35 }
 0x56c   : > { %v1336_v36 = vpop.permute.xlu1 %1335 }
 0x56d   : > { %v1417_v58 = vpop.permute.xlu0 %1416  ;;  %2283 = vmatpush.xpose.msk.msra.mxu3 %vm995_vm9, %v1336_v36 }
 0x56e   : > { %2287 = vmatmul.msk.f32.vlgmr.msra.gmra.mxu2 %vm995_vm9, %v1417_v58 }
 0x574   : > { %v1499_v37 = vpop.permute.xlu1 %1498 }
 0x575   : > { %v1497_v55 = vpop.permute.xlu0 %1496 }
 0x59e   : > { %v1267_v56 = vpop.xlane.xlu2 %1266 }
 0x59f   : > { %v1193_v38 = vpop.xlane.xlu1 %1192  ;;  %v1268_v57 = vsub.f32 %v1264_v29, %v1267_v56 }
 0x5a0   : > { %2485 = vrcp.f32 %v1193_v38  ;;  %v1205_v43 = vand.u32 2147483648, %v1193_v38  ;;  %v1203_v45 = vand.u32 2147483647, %v1193_v38  ;;  %vm1199_vm11 = vweird.f32 %v1193_v38 }
 0x5a1   : > { %v1269_v60 = vmul.f32 1.442695, %v1268_v57 }
 0x5a2   : > { %v1206_v48 = vor.u32 1.1754944e-38, %v1205_v43  ;;  %vm1204_vm13 = vcmp.eq.f32.partialorder %v1203_v45, 8.507059e+37 }
 0x5a3   : > { %2487 = vpow2.f32 %v1269_v60 }
 0x5a6   : > { %v2486_v40 = vpop.eup %2485 }
 0x5a7   : > { %v1195_v41 = vmul.f32 %v2486_v40, %v1193_v38  ;;  %vm1200_vm10 = vweird.f32 %v2486_v40 }
 0x5a8   : > { %vm1201_vm12 = vmor %vm1199_vm11, %vm1200_vm10 }
 0x5a9   : > { %v1196_v42 = vsub.f32 1.0, %v1195_v41  ;;  %v3332_v1 = vpop.eup %2487 }
 0x5aa   : > { %v1271_v3 = vsel %vm995_vm9, %v3332_v1, 0.0 }
 0x5ab   : > { %v1197_v44 = vmul.f32 %v2486_v40, %v1196_v42 }
 0x5ad   : > { %v1198_v47 = vadd.f32 %v2486_v40, %v1197_v44 }
 0x5af   : > { %v1202_v49 = vsel %vm1201_vm12, %v2486_v40, %v1198_v47 }
 0x5b0   : > { %v1207_v51 = vsel %vm1204_vm13, %v1206_v48, %v1202_v49 }
 0x5b1   : > { %v1208_v53 = vmul.f32 %v2484_v30, %v1207_v51 }
 0x5b3   : > { %2278 = vmatmul.msk.f32.vlgmr.msrb.gmra.mxu3 %vm995_vm9, %v1208_v53 }
 0x5b4   : > { %2289 = vmatpush.xpose.msk.msrb.mxu3 %vm995_vm9, %v1499_v37 }
 0x5b7   : > { %v1577_v54 = vpop.permute.xlu1 %1576 }
 0x5b8   : > { %2293 = vmatmul.msk.f32.vlgmr.msrb.gmra.mxu2 %vm995_vm9, %v1577_v54 }
 0x5bb   : > { %2284 = vmatmul.msk.f32.vlgmr.msra.gmra.mxu3 %vm995_vm9, %v3299_v16 }
 0x5c3   : > { %2290 = vmatmul.msk.f32.vlgmr.msrb.gmra.mxu3 %vm995_vm9, %v1497_v55 }
 0x5f1   : > { %v1441_v61 = vpop.f32.mrf.mxu2 }
 0x5f2   : > { %v1444_v62 = vmul.f32 0.35355338, %v1441_v61 }
 0x5f4   : > { %v1445_v63 = vadd.f32 %v2459_v59, %v1444_v62 }
 0x5f6   : > { %v1446_v0 = vsel %vm995_vm9, %v1445_v63, -inf }
 0x5f7   : > { %1447 = vmax.xlane.f32.xlu1 %v1446_v0 }
 0x5ff   : > { %1272 = vadd.xlane.f32.xlu1 %v1271_v3 }
 0x618   : > { %1390 = vrot.lane.b32.xlu1 %v3299_v16, %s2820_s14 }
 0x636   : > { %v3338_v4 = vpop.f32.mrf.mxu3 }
 0x63b   : > { %v1601_v7 = vpop.f32.mrf.mxu2 }
 0x63c   : > { %v1604_v9 = vmul.f32 0.35355338, %v1601_v7 }
 0x63e   : > { %v1358_v5 = vpop.f32.mrf.mxu3  ;;  %v1605_v14 = vadd.f32 %v2459_v59, %v1604_v9 }
 0x63f   : > { %v1361_v6 = vmul.f32 0.35355338, %v1358_v5 }
 0x640   : > { %v1606_v17 = vsel %vm995_vm9, %v1605_v14, -inf }
 0x641   : > { %v1365_v8 = vadd.f32 %v2459_v59, %v1361_v6 }
 0x643   : > { %v1366_v11 = vsel %vm995_vm9, %v1365_v8, -inf }
 0x644   : > { %1367 = vmax.xlane.f32.xlu0 %v1366_v11 }
 0x646   : > { %v1521_v12 = vpop.f32.mrf.mxu3 }
 0x647   : > { %v1524_v13 = vmul.f32 0.35355338, %v1521_v12 }
 0x649   : > { %v1525_v15 = vadd.f32 %v2459_v59, %v1524_v13 }
 0x64b   : > { %v1526_v18 = vsel %vm995_vm9, %v1525_v15, -inf }
 0x64c   : > { %1607 = vmax.xlane.f32.xlu0 %v1606_v17  ;;  %1527 = vmax.xlane.f32.xlu2 %v1526_v18 }
 0x66a   : > { %v1448_v20 = vpop.xlane.xlu1 %1447 }
 0x66b   : > { %v1449_v21 = vsub.f32 %v1445_v63, %v1448_v20 }
 0x66d   : > { %v1450_v22 = vmul.f32 1.442695, %v1449_v21 }
 0x66f   : > { %2489 = vpow2.f32 %v1450_v22 }
 0x672   : > { %v1273_v50 = vpop.xlane.xlu1 %1272 }
 0x673   : > { %v1285_v44 = vand.u32 2147483648, %v1273_v50  ;;  %vm1279_vm15 = vweird.f32 %v1273_v50  ;;  %v1283_v45 = vand.u32 2147483647, %v1273_v50 }
 0x675   : > { %v3343_v23 = vpop.eup %2489  ;;  %v1286_v49 = vor.u32 1.1754944e-38, %v1285_v44  ;;  %vm1284_vm2 = vcmp.eq.f32.partialorder %v1283_v45, 8.507059e+37  ;;  %v1674_v45 = vld [vmem:[%s3168_s10 + $0x18] sm:$0xff] }
 0x676   : > { %v1452_v39 = vsel %vm995_vm9, %v3343_v23, 0.0  ;;  %1697 = vmatpush.msra.mxu3 %v1674_v45 }
 0x677   : > { %1453 = vadd.xlane.f32.xlu0 %v1452_v39 }
 0x68a   : > { %v1391_v24 = vpop.permute.xlu1 %1390 }
 0x68b   : > { %1289 = vrot.lane.b32.xlu0 %v3241_v52, %s2826_s13  ;;  %1411 = vmatpush.msrb.mxu0 %v1391_v24 }
 0x693   : > { %1550 = vrot.lane.b32.xlu0 %v3299_v16, %s2825_s30 }
 0x69b   : > { %1316 = vrot.lane.b32.xlu0 %v3313_v46, %s2827_s0 }
 0x6b7   : > { %v1368_v25 = vpop.xlane.xlu0 %1367 }
 0x6b8   : > { %v1369_v33 = vsub.f32 %v1365_v8, %v1368_v25 }
 0x6ba   : > { %v1370_v34 = vmul.f32 1.442695, %v1369_v33 }
 0x6bf   : > { %v1528_v27 = vpop.xlane.xlu2 %1527  ;;  %v1608_v28 = vpop.xlane.xlu0 %1607 }
 0x6c0   : > { %v1529_v29 = vsub.f32 %v1525_v15, %v1528_v27  ;;  %v1609_v30 = vsub.f32 %v1605_v14, %v1608_v28 }
 0x6c2   : > { %v1530_v31 = vmul.f32 1.442695, %v1529_v29  ;;  %v1610_v32 = vmul.f32 1.442695, %v1609_v30 }
 0x6c4   : > { %2491 = vpow2.f32 %v1530_v31 }
 0x6c5   : > { %2493 = vpow2.f32 %v1610_v32 }
 0x6c6   : > { %2495 = vpow2.f32 %v1370_v34 }
 0x6c7   : > { %2497 = vrcp.f32 %v1273_v50 }
 0x6ca   : > { %v3352_v52 = vpop.eup %2491 }
 0x6cb   : > { %v3354_v35 = vpop.eup %2493  ;;  %v1532_v36 = vsel %vm995_vm9, %v3352_v52, 0.0 }
 0x6cc   : > { %1533 = vadd.xlane.f32.xlu1 %v1532_v36  ;;  %v1612_v46 = vsel %vm995_vm9, %v3354_v35, 0.0  ;;  %v3360_v58 = vpop.eup %2495 }
 0x6cd   : > { %1613 = vadd.xlane.f32.xlu2 %v1612_v46  ;;  %v1372_v37 = vsel %vm995_vm9, %v3360_v58, 0.0  ;;  %v2498_v38 = vpop.eup %2497 }
 0x6ce   : > { %v1275_v40 = vmul.f32 %v2498_v38, %v1273_v50  ;;  %vm1280_vm14 = vweird.f32 %v2498_v38 }
 0x6cf   : > { %vm1281_vm0 = vmor %vm1279_vm15, %vm1280_vm14 }
 0x6d0   : > { %v1276_v41 = vsub.f32 1.0, %v1275_v40 }
 0x6d2   : > { %v1277_v42 = vmul.f32 %v2498_v38, %v1276_v41 }
 0x6d4   : > { %v1278_v43 = vadd.f32 %v2498_v38, %v1277_v42 }
 0x6d5   : > { %1373 = vadd.xlane.f32.xlu2 %v1372_v37 }
 0x6d6   : > { %v1282_v48 = vsel %vm1281_vm0, %v2498_v38, %v1278_v43 }
 0x6d7   : > { %v1287_v51 = vsel %vm1284_vm2, %v1286_v49, %v1282_v48  ;;  %v1671_v49 = vld [vmem:[%s3168_s10] sm:$0xff] }
 0x6d8   : > { %v1288_v54 = vmul.f32 %v3332_v1, %v1287_v51 }
 0x6e5   : > { %1630 = vrot.lane.b32.xlu1 %v3299_v16, %s2826_s13 }
 0x6ea   : > { %v1454_v47 = vpop.xlane.xlu0 %1453 }
 0x6eb   : > { %2499 = vrcp.f32 %v1454_v47  ;;  %v1466_v0 = vand.u32 2147483648, %v1454_v47  ;;  %vm1460_vm4 = vweird.f32 %v1454_v47  ;;  %v1464_v1 = vand.u32 2147483647, %v1454_v47 }
 0x6ed   : > { %1470 = vrot.lane.b32.xlu2 %v3299_v16, %s2822_s19  ;;  %v1467_v8 = vor.u32 1.1754944e-38, %v1466_v0  ;;  %vm1465_vm6 = vcmp.eq.f32.partialorder %v1464_v1, 8.507059e+37 }
 0x6f1   : > { %v2500_v55 = vpop.eup %2499 }
 0x6f2   : > { %v1456_v56 = vmul.f32 %v2500_v55, %v1454_v47  ;;  %vm1461_vm3 = vweird.f32 %v2500_v55  ;;  %v1673_v47 = vld [vmem:[%s3168_s10 + $0x10] sm:$0xff] }
 0x6f3   : > { %vm1462_vm5 = vmor %vm1460_vm4, %vm1461_vm3  ;;  %1698 = vmatpush.msra.mxu3 %v1673_v47 }
 0x6f4   : > { %v1457_v57 = vsub.f32 1.0, %v1456_v56 }
 0x6f5   : > { %1320 = vrot.lane.b32.xlu2 %v3338_v4, %s2828_s23 }
 0x6f6   : > { %v1458_v61 = vmul.f32 %v2500_v55, %v1457_v57 }
 0x6f8   : > { %v1459_v62 = vadd.f32 %v2500_v55, %v1458_v61 }
 0x6fa   : > { %v1463_v6 = vsel %vm1462_vm5, %v2500_v55, %v1459_v62  ;;  %vm1328_vm5 = vcmask 130048  }
 0x6fb   : > { %v1468_v12 = vsel %vm1465_vm6, %v1467_v8, %v1463_v6  ;;  %vm1330_vm6 = vcmask 195584  }
 0x6fc   : > { %v1469_v22 = vmul.f32 %v3343_v23, %v1468_v12 }
 0x6fd   : > { %v1290_v53 = vpop.permute.xlu0 %1289 }
 0x6fe   : > { %1310 = vmatpush.msrb.mxu1 %v1290_v53 }
 0x6ff   : > { %2281 = vmatmul.msk.f32.vlgmr.msrb.gmra.mxu1 %vm995_vm9, %v1288_v54 }
 0x705   : > { %v1551_v16 = vpop.permute.xlu0 %1550 }
 0x706   : > { %1571 = vmatpush.msra.mxu0 %v1551_v16 }
 0x70d   : > { %v1317_v54 = vpop.permute.xlu0 %1316 }
 0x70e   : > { %v1327_v55 = vsel %vm995_vm9, %v3292_v19, %v1317_v54 }
 0x73f   : > { %v3371_v59 = vpop.xlane.xlu1 %1533 }
 0x740   : > { %v1614_v60 = vpop.xlane.xlu2 %1613  ;;  %v1546_v46 = vand.u32 2147483648, %v3371_v59  ;;  %vm1540_vm2 = vweird.f32 %v3371_v59  ;;  %v1544_v38 = vand.u32 2147483647, %v3371_v59 }
 0x741   : > { %2501 = vrcp.f32 %v1614_v60  ;;  %v1624_v15 = vand.u32 2147483647, %v1614_v60  ;;  %v1626_v17 = vand.u32 2147483648, %v1614_v60  ;;  %vm1620_vm8 = vweird.f32 %v1614_v60 }
 0x742   : > { %2503 = vrcp.f32 %v3371_v59  ;;  %vm1545_vm4 = vcmp.eq.f32.partialorder %v1544_v38, 8.507059e+37 }
 0x743   : > { %vm1625_vm11 = vcmp.eq.f32.partialorder %v1624_v15, 8.507059e+37  ;;  %v1627_v24 = vor.u32 1.1754944e-38, %v1626_v17 }
 0x747   : > { %v2502_v63 = vpop.eup %2501 }
 0x748   : > { %v1616_v3 = vmul.f32 %v2502_v63, %v1614_v60  ;;  %v1374_v4 = vpop.xlane.xlu2 %1373  ;;  %v2504_v5 = vpop.eup %2503  ;;  %vm1621_vm7 = vweird.f32 %v2502_v63 }
 0x749   : > { %2505 = vrcp.f32 %v1374_v4  ;;  %v1536_v9 = vmul.f32 %v2504_v5, %v3371_v59  ;;  %vm1622_vm10 = vmor %vm1620_vm8, %vm1621_vm7  ;;  %v1386_v25 = vand.u32 2147483648, %v1374_v4  ;;  %v1384_v29 = vand.u32 2147483647, %v1374_v4 }
 0x74a   : > { %v1617_v7 = vsub.f32 1.0, %v1616_v3  ;;  %vm1380_vm13 = vweird.f32 %v1374_v4  ;;  %vm1541_vm14 = vweird.f32 %v2504_v5  ;;  %v2460_v3 = vld [vmem:[%s3638_s17] ss:$0 sm:$0xff] }
 0x74b   : > { %v1537_v18 = vsub.f32 1.0, %v1536_v9  ;;  %v1387_v32 = vor.u32 1.1754944e-38, %v1386_v25  ;;  %vm1385_vm0 = vcmp.eq.f32.partialorder %v1384_v29, 8.507059e+37  ;;  %vm1542_vm3 = vmor %vm1540_vm2, %vm1541_vm14 }
 0x74c   : > { %v1618_v11 = vmul.f32 %v2502_v63, %v1617_v7 }
 0x74d   : > { %v1538_v27 = vmul.f32 %v2504_v5, %v1537_v18 }
 0x74e   : > { %v1619_v13 = vadd.f32 %v2502_v63, %v1618_v11 }
 0x74f   : > { %v2506_v14 = vpop.eup %2505  ;;  %v1539_v33 = vadd.f32 %v2504_v5, %v1538_v27 }
 0x750   : > { %v1376_v20 = vmul.f32 %v2506_v14, %v1374_v4  ;;  %v1471_v21 = vpop.permute.xlu2 %1470  ;;  %v1623_v39 = vsel %vm1622_vm10, %v2502_v63, %v1619_v13  ;;  %vm1381_vm12 = vweird.f32 %v2506_v14 }
 0x751   : > { %1491 = vmatpush.msra.mxu1 %v1471_v21  ;;  %v1628_v30 = vsel %vm1625_vm11, %v1627_v24, %v1623_v39  ;;  %vm1382_vm15 = vmor %vm1380_vm13, %vm1381_vm12  ;;  %v1543_v41 = vsel %vm1542_vm3, %v2504_v5, %v1539_v33  ;;  %v1800_v39 = vld [vmem:[%s3181_s2 + $0x10] sm:$0xff]  ;;  %v1798_v24 = vld [vmem:[%s3181_s2] sm:$0xff] }
 0x752   : > { %v1377_v50 = vsub.f32 1.0, %v1376_v20  ;;  %2288 = vmatmul.msk.f32.vlgmr.msra.gmra.mxu1 %vm995_vm9, %v1469_v22  ;;  %v1629_v34 = vmul.f32 %v3354_v35, %v1628_v30  ;;  %v1547_v35 = vor.u32 1.1754944e-38, %v1546_v46  ;;  %v1801_v22 = vld [vmem:[%s3181_s2 + $0x18] sm:$0xff] }
 0x754   : > { %v1378_v28 = vmul.f32 %v2506_v14, %v1377_v50  ;;  %v1548_v42 = vsel %vm1545_vm4, %v1547_v35, %v1543_v41  ;;  %v1799_v50 = vld [vmem:[%s3181_s2 + $0x8] sm:$0xff]  ;;  %vm1845_vm4 = vcmask 523264  }
 0x755   : > { %v1549_v43 = vmul.f32 %v3352_v52, %v1548_v42  ;;  %v2461_v42 = vld [vmem:[%s707_s15] ss:$0 sm:$0xff] }
 0x756   : > { %v1379_v31 = vadd.f32 %v2506_v14, %v1378_v28 }
 0x757   : > { %v1631_v23 = vpop.permute.xlu1 %1630 }
 0x758   : > { %1651 = vmatpush.msrb.mxu1 %v1631_v23  ;;  %v1383_v36 = vsel %vm1382_vm15, %v2506_v14, %v1379_v31  ;;  %v1321_v16 = vpop.permute.xlu2 %1320 }
 0x759   : > { %v1388_v37 = vsel %vm1385_vm0, %v1387_v32, %v1383_v36  ;;  %v1329_v56 = vsel %vm1328_vm5, %v1327_v55, %v1321_v16 }
 0x75a   : > { %2294 = vmatmul.msk.f32.vlgmr.msrb.gmra.mxu1 %vm995_vm9, %v1629_v34  ;;  %v1389_v40 = vmul.f32 %v3360_v58, %v1388_v37  ;;  %v1672_v58 = vld [vmem:[%s3168_s10 + $0x8] sm:$0xff] }
 0x75b   : > { %1699 = vmatpush.msra.mxu3 %v1672_v58 }
 0x75c   : > { %2285 = vmatmul.msk.f32.vlgmr.msrb.gmra.mxu0 %vm995_vm9, %v1389_v40 }
 0x75d   : > { %1700 = vmatpush.msra.mxu3 %v1671_v49  ;;  %1824 = vmatpush.msrb.mxu0 %v1801_v22  ;;  %v2462_v49 = vld [vmem:[%s829_s12] ss:$0 sm:$0xff] }
 0x75f   : > { %1825 = vmatpush.msrb.mxu0 %v1800_v39 }
 0x761   : > { %1826 = vmatpush.msrb.mxu0 %v1799_v50 }
 0x763   : > { %1827 = vmatpush.msrb.mxu0 %v1798_v24  ;;  %v1839_v24 = vld [vmem:[%s3195_s11 + $0x10] sm:$0xff] }
 0x764   : > { %2291 = vmatmul.msk.f32.vlgmr.msra.gmra.mxu0 %vm995_vm9, %v1549_v43 }
 0x77c   : > { %v1312_v44 = vpop.f32.mrf.mxu1 }
 0x77d   : > { %1324 = vrot.lane.b32.xlu1 %v1312_v44, %s2829_s29 }
 0x7cf   : > { %v1493_v48 = vpop.f32.mrf.mxu1 }
 0x7d0   : > { %1657 = vrot.lane.b32.xlu0 %v1493_v48, %s2827_s0 }
 0x7d7   : > { %v1653_v51 = vpop.f32.mrf.mxu1 }
 0x7d8   : > { %1665 = vrot.lane.b32.xlu1 %v1653_v51, %s2829_s29 }
 0x7d9   : > { %v1413_v53 = vpop.f32.mrf.mxu0 }
 0x7e1   : > { %v1573_v52 = vpop.f32.mrf.mxu0 }
 0x7e2   : > { %1661 = vrot.lane.b32.xlu2 %v1573_v52, %s2828_s23 }
 0x7ef   : > { %v1325_v57 = vpop.permute.xlu1 %1324 }
 0x7f0   : > { %v1331_v59 = vsel %vm1330_vm6, %v1329_v56, %v1325_v57 }
 0x7f1   : > { %2295 = vmatmul.msk.f32.vlgmr.msra.gmra.mxu3 %vm860_vm1, %v1331_v59 }
 0x83c   : > { %v1662_v62 = vpop.permute.xlu2 %1661 }
 0x842   : > { %v1658_v60 = vpop.permute.xlu0 %1657 }
 0x843   : > { %v1668_v61 = vsel %vm995_vm9, %v1413_v53, %v1658_v60  ;;  %v1844_v60 = vld [vmem:[%s3195_s11 + $0x38] sm:$0xff] }
 0x844   : > { %v1669_v0 = vsel %vm1328_vm5, %v1668_v61, %v1662_v62  ;;  %v1843_v61 = vld [vmem:[%s3195_s11 + $0x30] sm:$0xff]  ;;  %1860 = vmatpush.msra.mxu2 %v1844_v60 }
 0x846   : > { %1861 = vmatpush.msra.mxu2 %v1843_v61 }
 0x84a   : > { %v1666_v63 = vpop.permute.xlu1 %1665 }
 0x84b   : > { %v1670_v1 = vsel %vm1330_vm6, %v1669_v0, %v1666_v63  ;;  %v1842_v63 = vld [vmem:[%s3195_s11 + $0x28] sm:$0xff] }
 0x84c   : > { %2296 = vmatmul.msk.f32.gmra.mxu3 %vm860_vm1, %v1670_v1  ;;  %v1841_v1 = vld [vmem:[%s3195_s11 + $0x20] sm:$0xff]  ;;  %1862 = vmatpush.msra.mxu2 %v1842_v63 }
 0x84e   : > { %1863 = vmatpush.msra.mxu2 %v1841_v1 }
 0x874   : > { %v1702_v19 = vpop.f32.mrf.mxu3 }
 0x875   : > { %v1703_v4 = vadd.f32 %v2460_v3, %v1702_v19 }
 0x877   : > { %v3404_v5 = vadd.f32 %v1703_v4, %v3205_v2  ;;  %v1840_v4 = vld [vmem:[%s3195_s11 + $0x18] sm:$0xff] }
 0x878   : > { %1864 = vmatpush.msra.mxu2 %v1840_v4 }
 0x879   : > { %v1712_v6 = vsel %vm860_vm1, %v3404_v5, 0.0 }
 0x87a   : > { %1713 = vadd.xlane.f32.xlu0 %v1712_v6  ;;  %1865 = vmatpush.msra.mxu2 %v1839_v24 }
 0x8cf   : > { %v1705_v7 = vpop.f32.mrf.mxu3 }
 0x8d0   : > { %v1706_v8 = vadd.f32 %v2460_v3, %v1705_v7 }
 0x8d2   : > { %v3409_v9 = vadd.f32 %v1706_v8, %v3218_v26 }
 0x8d4   : > { %v1715_v11 = vsel %vm860_vm1, %v3409_v9, 0.0 }
 0x8d5   : > { %1716 = vadd.xlane.f32.xlu2 %v1715_v11 }
 0x8ed   : > { %v1714_v12 = vpop.xlane.xlu0 %1713 }
 0x8ee   : > { %v1718_v2 = vmul.f32 %v1714_v12, %v3209_v10 }
 0x8f0   : > { %v1720_v13 = vsub.f32 %v3404_v5, %v1718_v2 }
 0x8f2   : > { %v1722_v14 = vmul.f32 %v1720_v13, %v1720_v13  ;;  %v1759_v58 = vmul.f32 %v2461_v42, %v1720_v13 }
 0x8f4   : > { %v1724_v15 = vsel %vm860_vm1, %v1722_v14, 0.0 }
 0x8f5   : > { %1725 = vadd.xlane.f32.xlu1 %v1724_v15 }
 0x948   : > { %v1717_v17 = vpop.xlane.xlu2 %1716 }
 0x949   : > { %v1719_v26 = vmul.f32 %v1717_v17, %v3209_v10 }
 0x94b   : > { %v3418_v18 = vsub.f32 %v3409_v9, %v1719_v26 }
 0x94d   : > { %v1723_v20 = vmul.f32 %v3418_v18, %v3418_v18 }
 0x94f   : > { %v1727_v21 = vsel %vm860_vm1, %v1723_v20, 0.0  ;;  %v1760_v20 = vmul.f32 %v2461_v42, %v3418_v18 }
 0x950   : > { %1728 = vadd.xlane.f32.xlu0 %v1727_v21 }
 0x968   : > { %v1726_v25 = vpop.xlane.xlu1 %1725 }
 0x969   : > { %v1730_v27 = vmul.f32 0.032258064, %v1726_v25  ;;  %v1838_v25 = vld [vmem:[%s3195_s11 + $0x8] sm:$0xff] }
 0x96a   : > { %1866 = vmatpush.msra.mxu2 %v1838_v25 }
 0x96b   : > { %2507 = vrsqrt.f32 %v1730_v27  ;;  %vm1739_vm9 = vcmp.eq.f32.partialorder %v1730_v27, inf  ;;  %v1742_v34 = vand.u32 2147483648, %v1730_v27  ;;  %vm1741_vm7 = vcmp.eq.f32.partialorder %v1730_v27, 0.0 }
 0x971   : > { %v2508_v28 = vpop.eup %2507 }
 0x972   : > { %v1733_v29 = vmul.f32 %v2508_v28, %v1730_v27 }
 0x974   : > { %v1734_v30 = vmul.f32 %v2508_v28, %v1733_v29 }
 0x976   : > { %v1735_v31 = vmul.f32 0.5, %v1734_v30 }
 0x978   : > { %v1736_v32 = vsub.f32 1.5, %v1735_v31 }
 0x97a   : > { %v1737_v23 = vmul.f32 %v2508_v28, %v1736_v32  ;;  %v2463_v28 = vld [vmem:[%s837_s8] ss:$0 sm:$0xff]  ;;  %s3642_s8 = sld [smem:[#allocation22_spill]] }
 0x97c   : > { %v1738_v33 = vmul.f32 %v1737_v23, %v1730_v27 }
 0x97e   : > { %v1740_v36 = vsel %vm1739_vm9, %v1730_v27, %v1738_v33  ;;  %v1837_v27 = vld [vmem:[%s3195_s11] sm:$0xff] }
 0x97f   : > { %v1743_v46 = vsel %vm1741_vm7, %v1742_v34, %v1740_v36  ;;  %1867 = vmatpush.msra.mxu2 %v1837_v27  ;;  %v2464_v33 = vld [vmem:[%s845_s25] ss:$0 sm:$0xff] }
 0x980   : > { %v1761_v37 = vadd.f32 1e-06, %v1743_v46  ;;  %p2301_p4 = scmp.ne.s32.totalorder %s3642_s8, 1 }
 0x981   : > { %s3643_s11 = sld [smem:[#allocation47_spill]] (!%p2301_p4) }
 0x982   : > { %2509 = vrcp.f32 %v1761_v37  ;;  %v1774_v35 = vand.u32 2147483648, %v1761_v37  ;;  %v1772_v44 = vand.u32 2147483647, %v1761_v37  ;;  %vm1768_vm10 = vweird.f32 %v1761_v37  ;;  %s3644_s21 = sld [smem:[#allocation48_spill]] (!%p2301_p4) }
 0x984   : > { %v1775_v47 = vor.u32 1.1754944e-38, %v1774_v35  ;;  %vm1773_vm12 = vcmp.eq.f32.partialorder %v1772_v44, 8.507059e+37 }
 0x988   : > { %v2510_v38 = vpop.eup %2509 }
 0x989   : > { %v1764_v40 = vmul.f32 %v2510_v38, %v1761_v37  ;;  %vm1769_vm8 = vweird.f32 %v2510_v38 }
 0x98a   : > { %vm1770_vm11 = vmor %vm1768_vm10, %vm1769_vm8 }
 0x98b   : > { %v1765_v41 = vsub.f32 1.0, %v1764_v40 }
 0x98d   : > { %v1766_v43 = vmul.f32 %v2510_v38, %v1765_v41 }
 0x98f   : > { %v1767_v45 = vadd.f32 %v2510_v38, %v1766_v43 }
 0x991   : > { %v1771_v48 = vsel %vm1770_vm11, %v2510_v38, %v1767_v45 }
 0x992   : > { %v1776_v51 = vsel %vm1773_vm12, %v1775_v47, %v1771_v48 }
 0x993   : > { %v1777_v53 = vmul.f32 %v1776_v51, %v1759_v58 }
 0x995   : > { %v1796_v52 = vadd.f32 %v2462_v49, %v1777_v53 }
 0x997   : > { %2297 = vmatmul.msk.f32.vlgmr.msrb.gmra.mxu0 %vm860_vm1, %v1796_v52 }
 0x9c3   : > { %v1729_v54 = vpop.xlane.xlu0 %1728 }
 0x9c4   : > { %v1731_v16 = vmul.f32 0.032258064, %v1729_v54 }
 0x9c6   : > { %2511 = vrsqrt.f32 %v1731_v16  ;;  %vm1751_vm13 = vcmp.eq.f32.partialorder %v1731_v16, inf  ;;  %v1754_v19 = vand.u32 2147483648, %v1731_v16  ;;  %vm1753_vm14 = vcmp.eq.f32.partialorder %v1731_v16, 0.0 }
 0x9cc   : > { %v2512_v55 = vpop.eup %2511 }
 0x9cd   : > { %v1745_v56 = vmul.f32 %v2512_v55, %v1731_v16 }
 0x9cf   : > { %v1746_v57 = vmul.f32 %v2512_v55, %v1745_v56 }
 0x9d1   : > { %v1747_v59 = vmul.f32 0.5, %v1746_v57 }
 0x9d3   : > { %v1748_v62 = vsub.f32 1.5, %v1747_v59 }
 0x9d5   : > { %v1749_v0 = vmul.f32 %v2512_v55, %v1748_v62 }
 0x9d7   : > { %v1750_v3 = vmul.f32 %v1749_v0, %v1731_v16 }
 0x9d9   : > { %v1752_v6 = vsel %vm1751_vm13, %v1731_v16, %v1750_v3 }
 0x9da   : > { %v1755_v7 = vsel %vm1753_vm14, %v1754_v19, %v1752_v6 }
 0x9db   : > { %v1762_v8 = vadd.f32 1e-06, %v1755_v7 }
 0x9dd   : > { %2513 = vrcp.f32 %v1762_v8  ;;  %v1789_v13 = vand.u32 2147483648, %v1762_v8  ;;  %v1787_v15 = vand.u32 2147483647, %v1762_v8  ;;  %vm1783_vm0 = vweird.f32 %v1762_v8 }
 0x9df   : > { %v1790_v26 = vor.u32 1.1754944e-38, %v1789_v13  ;;  %vm1788_vm3 = vcmp.eq.f32.partialorder %v1787_v15, 8.507059e+37 }
 0x9e3   : > { %v2514_v11 = vpop.eup %2513 }
 0x9e4   : > { %v1779_v12 = vmul.f32 %v2514_v11, %v1762_v8  ;;  %vm1784_vm15 = vweird.f32 %v2514_v11 }
 0x9e5   : > { %vm1785_vm2 = vmor %vm1783_vm0, %vm1784_vm15 }
 0x9e6   : > { %v1780_v2 = vsub.f32 1.0, %v1779_v12 }
 0x9e8   : > { %v1781_v14 = vmul.f32 %v2514_v11, %v1780_v2 }
 0x9ea   : > { %v1782_v17 = vadd.f32 %v2514_v11, %v1781_v14 }
 0x9ec   : > { %v1786_v21 = vsel %vm1785_vm2, %v2514_v11, %v1782_v17 }
 0x9ed   : > { %v1791_v22 = vsel %vm1788_vm3, %v1790_v26, %v1786_v21 }
 0x9ee   : > { %v1792_v39 = vmul.f32 %v1791_v22, %v1760_v20 }
 0x9f0   : > { %v1797_v50 = vadd.f32 %v2462_v49, %v1792_v39 }
 0x9f2   : > { %2298 = vmatmul.msk.f32.gmra.mxu0 %vm860_vm1, %v1797_v50 }
 0xa14   : > { %v1829_v18 = vpop.f32.mrf.mxu0 }
 0xa15   : > { %v1830_v29 = vadd.f32 %v2463_v28, %v1829_v18 }
 0xa17   : > { %v1835_v30 = vmax.f32 %v1830_v29, 0.0 }
 0xa19   : > { %2299 = vmatmul.msk.f32.vlgmr.msra.gmra.mxu2 %vm1845_vm4, %v1835_v30 }
 0xa6f   : > { %v1832_v31 = vpop.f32.mrf.mxu0 }
 0xa70   : > { %v1833_v32 = vadd.f32 %v2463_v28, %v1832_v31 }
 0xa72   : > { %v1836_v23 = vmax.f32 %v1833_v32, 0.0 }
 0xa74   : > { %2300 = vmatmul.msk.f32.gmra.mxu2 %vm1845_vm4, %v1836_v23 }
 0xa9c   : > { %v1869_v34 = vpop.f32.mrf.mxu2 }
 0xa9d   : > { %v1875_v36 = vadd.f32 %v1869_v34, %v3404_v5 }
 0xa9f   : > { %v1881_v46 = vadd.f32 %v2464_v33, %v1875_v36 }
 0xaa1   : > { %1883 = vst.msk [vmem:[#allocation2] sm:$0xff] %vm860_vm1, %v1881_v46 }
 0xaf7   : > { %v1872_v37 = vpop.f32.mrf.mxu2 }
 0xaf8   : > { %v1876_v38 = vadd.f32 %v1872_v37, %v3409_v9  ;;  %1888 = sbr.rel (%p2301_p4) target bundleno = 3108 (0xc24), region = 112 }
 0xafa   : > { %v1882_v40 = vadd.f32 %v2464_v33, %v1876_v38 }
 0xafc   : > { %1884 = vst.msk [vmem:[#allocation2 + $0x8] sm:$0xff] %vm860_vm1, %v1882_v40 }
 0xafd   : > { %v1891_v41 = vsel %vm860_vm1, %v1881_v46, 0.0  ;;  %v1894_v35 = vsel %vm860_vm1, %v1882_v40, 0.0  ;;  %v2515_v20 = vld [vmem:[%s3643_s11] ss:$0 sm:$0xff] }
 0xafe   : > { %1892 = vadd.xlane.f32.xlu0 %v1891_v41  ;;  %v2516_v28 = vld [vmem:[%s3644_s21] ss:$0 sm:$0xff] }
 0xb06   : > { %1895 = vadd.xlane.f32.xlu0 %v1894_v35 }
 0xb71   : > { %v1893_v42 = vpop.xlane.xlu0 %1892 }
 0xb72   : > { %v1897_v5 = vmul.f32 %v1893_v42, %v3209_v10 }
 0xb74   : > { %v1899_v43 = vsub.f32 %v1881_v46, %v1897_v5 }
 0xb76   : > { %v1901_v44 = vmul.f32 %v1899_v43, %v1899_v43  ;;  %v1938_v25 = vmul.f32 %v2515_v20, %v1899_v43 }
 0xb78   : > { %v1903_v45 = vsel %vm860_vm1, %v1901_v44, 0.0 }
 0xb79   : > { %1904 = vadd.xlane.f32.xlu1 %v1903_v45  ;;  %v1896_v9 = vpop.xlane.xlu0 %1895 }
 0xb7a   : > { %v1898_v47 = vmul.f32 %v1896_v9, %v3209_v10 }
 0xb7c   : > { %v3465_v58 = vsub.f32 %v1882_v40, %v1898_v47 }
 0xb7e   : > { %v1902_v48 = vmul.f32 %v3465_v58, %v3465_v58  ;;  %v1939_v37 = vmul.f32 %v2515_v20, %v3465_v58 }
 0xb80   : > { %v1906_v49 = vsel %vm860_vm1, %v1902_v48, 0.0 }
 0xb81   : > { %1907 = vadd.xlane.f32.xlu1 %v1906_v49 }
 0xbec   : > { %v1905_v51 = vpop.xlane.xlu1 %1904 }
 0xbed   : > { %v1909_v53 = vmul.f32 0.032258064, %v1905_v51 }
 0xbef   : > { %2517 = vrsqrt.f32 %v1909_v53  ;;  %vm1918_vm5 = vcmp.eq.f32.partialorder %v1909_v53, inf  ;;  %v1921_v0 = vand.u32 2147483648, %v1909_v53  ;;  %vm1920_vm6 = vcmp.eq.f32.partialorder %v1909_v53, 0.0 }
 0xbf4   : > { %v1908_v52 = vpop.xlane.xlu1 %1907 }
 0xbf5   : > { %v2518_v54 = vpop.eup %2517  ;;  %v1910_v16 = vmul.f32 0.032258064, %v1908_v52 }
 0xbf6   : > { %v1912_v55 = vmul.f32 %v2518_v54, %v1909_v53 }
 0xbf7   : > { %2519 = vrsqrt.f32 %v1910_v16  ;;  %vm1930_vm9 = vcmp.eq.f32.partialorder %v1910_v16, inf  ;;  %v1933_v11 = vand.u32 2147483648, %v1910_v16  ;;  %vm1932_vm7 = vcmp.eq.f32.partialorder %v1910_v16, 0.0 }
 0xbf8   : > { %v1913_v56 = vmul.f32 %v2518_v54, %v1912_v55 }
 0xbfa   : > { %v1914_v57 = vmul.f32 0.5, %v1913_v56 }
 0xbfc   : > { %v1915_v59 = vsub.f32 1.5, %v1914_v57 }
 0xbfd   : > { %v2520_v10 = vpop.eup %2519 }
 0xbfe   : > { %v1916_v60 = vmul.f32 %v2518_v54, %v1915_v59  ;;  %v1924_v61 = vmul.f32 %v2520_v10, %v1910_v16 }
 0xc00   : > { %v1917_v62 = vmul.f32 %v1916_v60, %v1909_v53  ;;  %v1925_v63 = vmul.f32 %v2520_v10, %v1924_v61 }
 0xc02   : > { %v1919_v1 = vsel %vm1918_vm5, %v1909_v53, %v1917_v62  ;;  %v1926_v3 = vmul.f32 0.5, %v1925_v63 }
 0xc03   : > { %v1922_v19 = vsel %vm1920_vm6, %v1921_v0, %v1919_v1 }
 0xc04   : > { %v1940_v4 = vadd.f32 1e-06, %v1922_v19  ;;  %v1927_v6 = vsub.f32 1.5, %v1926_v3 }
 0xc06   : > { %2521 = vrcp.f32 %v1940_v4  ;;  %v1928_v7 = vmul.f32 %v2520_v10, %v1927_v6  ;;  %v1953_v26 = vand.u32 2147483648, %v1940_v4  ;;  %v1951_v22 = vand.u32 2147483647, %v1940_v4 }
 0xc07   : > { %vm1947_vm10 = vweird.f32 %v1940_v4 }
 0xc08   : > { %v1929_v8 = vmul.f32 %v1928_v7, %v1910_v16  ;;  %v1954_v50 = vor.u32 1.1754944e-38, %v1953_v26  ;;  %vm1952_vm12 = vcmp.eq.f32.partialorder %v1951_v22, 8.507059e+37 }
 0xc0a   : > { %v1931_v12 = vsel %vm1930_vm9, %v1910_v16, %v1929_v8 }
 0xc0b   : > { %v1934_v13 = vsel %vm1932_vm7, %v1933_v11, %v1931_v12 }
 0xc0c   : > { %v2522_v2 = vpop.eup %2521  ;;  %v1941_v15 = vadd.f32 1e-06, %v1934_v13 }
 0xc0d   : > { %v1943_v14 = vmul.f32 %v2522_v2, %v1940_v4  ;;  %vm1948_vm8 = vweird.f32 %v2522_v2 }
 0xc0e   : > { %2523 = vrcp.f32 %v1941_v15  ;;  %vm1949_vm11 = vmor %vm1947_vm10, %vm1948_vm8  ;;  %v1968_v23 = vand.u32 2147483648, %v1941_v15  ;;  %v1966_v34 = vand.u32 2147483647, %v1941_v15  ;;  %vm1962_vm14 = vweird.f32 %v1941_v15 }
 0xc0f   : > { %v1944_v17 = vsub.f32 1.0, %v1943_v14 }
 0xc10   : > { %v1969_v46 = vor.u32 1.1754944e-38, %v1968_v23  ;;  %vm1967_vm0 = vcmp.eq.f32.partialorder %v1966_v34, 8.507059e+37 }
 0xc11   : > { %v1945_v21 = vmul.f32 %v2522_v2, %v1944_v17 }
 0xc13   : > { %v1946_v39 = vadd.f32 %v2522_v2, %v1945_v21 }
 0xc14   : > { %v2524_v24 = vpop.eup %2523 }
 0xc15   : > { %v1950_v27 = vsel %vm1949_vm11, %v2522_v2, %v1946_v39  ;;  %v1958_v29 = vmul.f32 %v2524_v24, %v1941_v15  ;;  %vm1963_vm13 = vweird.f32 %v2524_v24 }
 0xc16   : > { %v1955_v18 = vsel %vm1952_vm12, %v1954_v50, %v1950_v27  ;;  %vm1964_vm15 = vmor %vm1962_vm14, %vm1963_vm13 }
 0xc17   : > { %v1956_v30 = vmul.f32 %v1955_v18, %v1938_v25  ;;  %v1959_v31 = vsub.f32 1.0, %v1958_v29 }
 0xc19   : > { %v1975_v32 = vadd.f32 %v2516_v28, %v1956_v30  ;;  %v1960_v33 = vmul.f32 %v2524_v24, %v1959_v31 }
 0xc1b   : > { %1977 = vst.msk [vmem:[%s3200_s24] sm:$0xff] %vm860_vm1, %v1975_v32  ;;  %v1961_v36 = vadd.f32 %v2524_v24, %v1960_v33 }
 0xc1d   : > { %v1965_v38 = vsel %vm1964_vm15, %v2524_v24, %v1961_v36 }
 0xc1e   : > { %v1970_v40 = vsel %vm1967_vm0, %v1969_v46, %v1965_v38 }
 0xc1f   : > { %v1971_v41 = vmul.f32 %v1970_v40, %v1939_v37 }
 0xc21   : > { %v1976_v35 = vadd.f32 %v2516_v28, %v1971_v41 }
 0xc23   : > { %1978 = vst.msk [vmem:[%s3200_s24 + $0x8] sm:$0xff] %vm860_vm1, %v1976_v35 }
 0xc24 PF: > { %s3645_s19 = sld [smem:[#allocation23_spill]]  ;;  %s1992_s5 = sshll.u32 %s3200_s24, 4  ;;  %s1993_s5 = int_to_ptr.vmem [resolvable:$true] %s1992_s5 }
 0xc25   : > { %s3647_s23 = sld [smem:[#allocation49_spill]]  ;;  %s1980_s17 = scalar_lea.sflag [#allocation5], %s3118_s3 }
 0xc2a   : > { %s2312_s27 = sshll.u32 %s3645_s19, 4 }
 0xc2b   : > { %s3648_s10 = smov %s3647_s23  ;;  %s1991_s29 = scalar_lea.hbm %s3647_s23, %s2312_s27 }
 0xc2c   : > { %s1994_s28 = sshll.u32 %s1991_s29, 4  ;;  %s2695_s12 = scalar_lea.hbm %s3648_s10, 32  ;;  %s1995_s28 = int_to_ptr.hbm [resolvable:$true] %s1994_s28 }
 0xc2d   : > { %s2689_s2 = sshra.s32 %s1995_s28, 4  ;;  %s2690_s2 = int_to_ptr.hbm [resolvable:$true] %s2689_s2 }
 0xc2e   : > { %s2691_s4 = scalar_lea.hbm %s2690_s2, 16  ;;  %p2696_p6 = scmp.lt.s32.totalorder %s2690_s2, %s3648_s10 }
 0xc2f   : > { %p2692_p7 = scmp.ne.s32.totalorder %s2690_s2, %s2691_s4  ;;  %p2697_p8 = scmp.lt.s32.totalorder %s2695_s12, %s2691_s4 }
 0xc31   : > { %p2693_p9 = pnand %p2692_p7, %p3063_p13  ;;  %p2698_p12 = por %p2697_p8, %p2696_p6 }
 0xc33   : > { %p2694_p11 = pneg %p2693_p9 }
 0xc35   : > { %p2699_p1 = pnand %p2698_p12, %p2694_p11 }
 0xc37   : > { %2702 = shalt.err (!%p2699_p1)
}
 0xc38   : > { %s2830_s3 = smov 128  }
 0xc39   : > { %2323 = dma.vmem_to_hbm [thread:$0]  (%p3063_p13), %s1993_s5, 256, %s1995_s28, %s1980_s17, %s2830_s3, %s2830_s3, %s2827_s0  }
 0xc3a PF: > { %s3649_s24 = sld [smem:[#allocation26_spill]] }
 0xc3b   : > { %s3650_s26 = sld [smem:[#allocation19_spill]] }
 0xc40   : > { %p2346_p10 = scmp.ge.s32.totalorder %s3649_s24, 2 }
 0xc41   : > { %s2009_s8 = sand.u32 1, %s3650_s26  }
 0xc42   : > { %p2342_p5 = pnand %p2346_p10, %p3070_p3  ;;  %s2010_s25 = scalar_lea.sflag [#allocation5], %s2009_s8 }
 0xc44   : > { %p2343_p0 = pneg %p2342_p5 }
 0xc46   : > { %2764 = dma.done.wait (%p2343_p0), %s2010_s25, 256  }
 0xc47   : > { %2766 = vsyncadd (%p2343_p0), %s2010_s25, 4294967040  ;;  %s38_s0 = sadd.s32 1, %s3649_s24   ;;  %s3652_s20 = sld [smem:[#allocation18_spill]] }
 0xc48   : > { %p35_p2 = scmp.ge.s32.totalorder %s38_s0, 6   ;;  %s3653_s23 = sld [smem:[#allocation29_spill]] }
 0xc49   : > { %s3654_s24 = sld [smem:[#allocation20_spill]]  ;;  %s3661_s21 = smov %s2773_s22 }
 0xc4a   : > { %s3655_s25 = sld [smem:[#allocation21_spill]] }
 0xc4b   : > { %s3656_s26 = sld [smem:[#allocation30_spill]]  ;;  %37 = sbr.rel (!%p35_p2) target bundleno = 31 (0x1f), region = 213 }
 0xc4c   : > { %s3657_s27 = sld [smem:[#allocation24_spill]] }
 0xc4d   : > { %s3658_s28 = sld [smem:[#allocation25_spill]]  ;;  %s3662_s22 = smov %s3652_s20 }
 0xc4e   : > { %s3659_s29 = sld [smem:[#allocation27_spill]] }
 0xc4f   : > { %s3660_s30 = sld [smem:[#allocation28_spill]] }
 0xc50   :  { %2016 = vsyncpa [#allocation4], 1 }
 0xc51   :  { %2018 = vsyncpa [#allocation4 + $0x1], 1 }
 0xc52   :  { %2019 = vsyncpa [#allocation7], 1 }
 0xc53   :  { %2021 = vsyncpa [#allocation7 + $0x1], 1 }
 0xc54   :  { %2022 = vsyncpa [#allocation10], 1 }
 0xc55   :  { %2024 = vsyncpa [#allocation10 + $0x1], 1 }
 0xc56   :  { %2025 = vsyncpa [#allocation5], 1 }
 0xc57   :  { %2027 = vsyncpa [#allocation5 + $0x1], 1 }

</bundles_post_ra>
